<compile_context>
chip_gen: v7x
topology: tpu7x:2x2x1
jax: 0.10.0
libtpu: 0.0.40
codegen_flags: <defaults>
</compile_context>

<pallas_src>
import jax
import jax.numpy as jnp
import numpy as np
from jax.experimental import pallas as pl
from jax.experimental.pallas import tpu as pltpu

MATMUL_DTYPE = jnp.bfloat16   # MXU operand dtype; accumulation is always f32
LANE = 128
SUBLANE = 8


def _round_up(x, m):
    return (x + m - 1) // m * m


def _sigmoid(x):
    # EUP-friendly: one tanh (EUP slot) + cheap VPU fma, no exact divide.
    return 0.5 * jnp.tanh(0.5 * x) + 0.5


# ------------------------------ fused kernel --------------------------------

def make_fused_lstm_kernel(num_layers, T, Bp, Gb):
    """Fused (LSTM stack + FC head) kernel for static (num_layers, T, Bp, Gb).

    Gb = per-gate block width in the packed weights (== H when 4*H <= 128,
    else H rounded up to 128). The hidden/cell carry width equals Gb; padded
    lanes (blocked fallback only) stay exactly zero through the recurrence.
    """

    def kernel(*refs):
        # refs = x2d, (wih, whh, b) * num_layers, wfc, bfc, out, [seq_scratch]
        x_ref = refs[0]
        layer_refs = [(refs[1 + 3 * l], refs[2 + 3 * l], refs[3 + 3 * l])
                      for l in range(num_layers)]
        wfc_ref = refs[1 + 3 * num_layers]
        bfc_ref = refs[2 + 3 * num_layers]
        out_ref = refs[3 + 3 * num_layers]
        seq_ref = refs[4 + 3 * num_layers] if num_layers > 1 else None

        # Current layer input as a (T*Bp, D_in) bf16 value.
        cur_in = x_ref[...]

        h_mm = None
        for li, (wih_ref, whh_ref, b_ref) in enumerate(layer_refs):
            last = li == num_layers - 1

            # Hoist weight/bias loads (and the bias broadcast) out of the loop.
            wih = wih_ref[...]            # (D_in_p, 4*Gb) bf16
            whh = whh_ref[...]            # (Gb,     4*Gb) bf16
            b = b_ref[...]                # (1,      4*Gb) f32

            # Input projection for the WHOLE sequence: one MXU matmul hoisted
            # out of the serial recurrence, f32 accumulation.
            gx = jnp.dot(cur_in, wih,
                         preferred_element_type=jnp.float32) + b   # (T*Bp, 4*Gb)

            h = jnp.zeros((Bp, Gb), jnp.float32)
            c = jnp.zeros((Bp, Gb), jnp.float32)
            h_mm = h.astype(MATMUL_DTYPE)

            # Fully unrolled time loop (T small & static): every slice/store is
            # a static, 8-sublane-aligned block (Bp == 8) -> unmasked accesses.
            for t in range(T):
                gates = gx[t * Bp:(t + 1) * Bp, :] + jnp.dot(
                    h_mm, whh, preferred_element_type=jnp.float32)  # (Bp, 4*Gb)
                i = _sigmoid(gates[:, 0 * Gb:1 * Gb])
                f = _sigmoid(gates[:, 1 * Gb:2 * Gb])
                g = jnp.tanh(gates[:, 2 * Gb:3 * Gb])
                o = _sigmoid(gates[:, 3 * Gb:4 * Gb])
                c = f * c + i * g
                h = o * jnp.tanh(c)
                h_mm = h.astype(MATMUL_DTYPE)      # reused: next step + scratch
                if not last:
                    # bf16 scratch store: next layer's matmul consumes bf16
                    # anyway -> no whole-buffer conversion between layers.
                    seq_ref[t * Bp:(t + 1) * Bp, :] = h_mm

            if not last:
                cur_in = seq_ref[...]              # (T*Bp, Gb) bf16

        # Fused FC head on the final hidden state only; lane-dense (Bp, Op).
        out = jnp.dot(h_mm, wfc_ref[...],
                      preferred_element_type=jnp.float32) + bfc_ref[...]
        out_ref[...] = out.astype(out_ref.dtype)

    return kernel


# ------------------------------ wrapper --------------------------------------

def simple_lstm_forecaster(x, packed_layers, wfc_p, bfc_p, out_dim):
    """x: (B, T, input_dim) batch_first, like the PyTorch module.

    Returns out: (B, out_dim) == fc(h_n[-1]).
    """
    B, T, D = x.shape
    num_layers = len(packed_layers)
    Dp = packed_layers[0][0].shape[0]     # padded input feature dim (layer 0)
    Gb = packed_layers[0][1].shape[0]     # per-gate block / carry width
    Op = wfc_p.shape[1]                   # padded output dim
    Bp = _round_up(max(B, SUBLANE), SUBLANE)

    # batch_first -> time-major, pad batch to a full sublane tile and the input
    # feature dim to Dp (zero columns match zero weight rows), then flatten to
    # (T*Bp, Dp) so the kernel's hoisted input projection is one big matmul.
    xt = jnp.transpose(x, (1, 0, 2))                          # (T, B, D)
    xt = jnp.pad(xt, ((0, 0), (0, Bp - B), (0, Dp - D)))      # (T, Bp, Dp)
    x2d = xt.reshape(T * Bp, Dp).astype(MATMUL_DTYPE)

    flat_inputs = [x2d]
    for (wih, whh, b) in packed_layers:
        flat_inputs += [wih, whh, b]
    flat_inputs += [wfc_p, bfc_p]

    vmem_spec = pl.BlockSpec(memory_space=pltpu.MemorySpace.VMEM)
    scratch = ([pltpu.VMEM((T * Bp, Gb), MATMUL_DTYPE)]
               if num_layers > 1 else [])

    out_padded = pl.pallas_call(
        make_fused_lstm_kernel(num_layers, T, Bp, Gb),
        out_shape=jax.ShapeDtypeStruct((Bp, Op), jnp.float32),
        in_specs=[vmem_spec] * len(flat_inputs),
        out_specs=vmem_spec,
        scratch_shapes=scratch,
    )(*flat_inputs)

    return out_padded[:B, :out_dim]


# --------------------------- param construction -----------------------------

def init_params(key, input_dim, hidden_dim, num_layers, horizon):
    """PyTorch-shaped params with U(-1/sqrt(H), 1/sqrt(H)) init."""
    bound = 1.0 / np.sqrt(hidden_dim)
    raw_layers = []
    d_in = input_dim
    for _ in range(num_layers):
        key, k1, k2, k3, k4 = jax.random.split(key, 5)
        w_ih = jax.random.uniform(k1, (4 * hidden_dim, d_in), jnp.float32, -bound, bound)
        w_hh = jax.random.uniform(k2, (4 * hidden_dim, hidden_dim), jnp.float32, -bound, bound)
        b_ih = jax.random.uniform(k3, (4 * hidden_dim,), jnp.float32, -bound, bound)
        b_hh = jax.random.uniform(k4, (4 * hidden_dim,), jnp.float32, -bound, bound)
        raw_layers.append((w_ih, w_hh, b_ih, b_hh))
        d_in = hidden_dim
    key, k5, k6 = jax.random.split(key, 3)
    out_dim = horizon * input_dim
    w_fc = jax.random.uniform(k5, (out_dim, hidden_dim), jnp.float32, -bound, bound)
    b_fc = jax.random.uniform(k6, (out_dim,), jnp.float32, -bound, bound)
    return raw_layers, w_fc, b_fc


def pack_params(raw_layers, w_fc, b_fc, hidden_dim):
    """Transpose, gate-block and pad params for the fused kernel.

    Gate layout [i | f | g | o], each block Gb lanes wide. When 4*H <= 128 the
    layout is compact (Gb = H, all gates in one 128-lane tile); otherwise each
    gate is padded to a 128-lane-aligned block. Padded weight/bias lanes are
    zero, so padded c/h lanes stay exactly 0 through the recurrence.
    """
    H = hidden_dim
    Gb = H if 4 * H <= LANE else _round_up(H, LANE)

    packed_layers = []
    for li, (w_ih, w_hh, b_ih, b_hh) in enumerate(raw_layers):
        d_in = w_ih.shape[1]
        # Layer 0: pad input dim to a sublane multiple. Layers >= 1: the input
        # is the previous layer's carry (width Gb) -> pad rows to Gb (zeros).
        d_in_p = _round_up(d_in, SUBLANE) if li == 0 else Gb

        wih_T = np.asarray(w_ih.T)                  # (d_in, 4H)
        whh_T = np.asarray(w_hh.T)                  # (H, 4H)
        bias = np.asarray(b_ih + b_hh)              # (4H,)

        wih_p = np.zeros((d_in_p, 4 * Gb), np.float32)
        whh_p = np.zeros((Gb, 4 * Gb), np.float32)
        b_p = np.zeros((1, 4 * Gb), np.float32)
        for k in range(4):
            wih_p[:d_in, k * Gb:k * Gb + H] = wih_T[:, k * H:(k + 1) * H]
            whh_p[:H, k * Gb:k * Gb + H] = whh_T[:, k * H:(k + 1) * H]
            b_p[0, k * Gb:k * Gb + H] = bias[k * H:(k + 1) * H]

        packed_layers.append((jnp.asarray(wih_p, MATMUL_DTYPE),
                              jnp.asarray(whh_p, MATMUL_DTYPE),
                              jnp.asarray(b_p, jnp.float32)))

    O = w_fc.shape[0]
    Op = _round_up(O, LANE)
    wfc_p = np.zeros((Gb, Op), np.float32)
    wfc_p[:H, :O] = np.asarray(w_fc.T)
    bfc_p = np.zeros((1, Op), np.float32)
    bfc_p[0, :O] = np.asarray(b_fc)
    return (packed_layers,
            jnp.asarray(wfc_p, MATMUL_DTYPE),
            jnp.asarray(bfc_p, jnp.float32),
            Gb, Op)


# ----------------------------- pure-JAX reference ----------------------------

def ref_forward(x, raw_layers, w_fc, b_fc):
    """f32 reference matching PyTorch nn.LSTM(batch_first=True) + Linear."""
    B, T, _ = x.shape
    seq = x.astype(jnp.float32)
    for (w_ih, w_hh, b_ih, b_hh) in raw_layers:
        H = w_hh.shape[1]
        wih_T, whh_T = w_ih.T, w_hh.T
        b = (b_ih + b_hh)[None, :]
        h = jnp.zeros((B, H), jnp.float32)
        c = jnp.zeros((B, H), jnp.float32)
        outs = []
        for t in range(T):
            gates = seq[:, t, :] @ wih_T + h @ whh_T + b
            i = jax.nn.sigmoid(gates[:, 0:H])
            f = jax.nn.sigmoid(gates[:, H:2 * H])
            g = jnp.tanh(gates[:, 2 * H:3 * H])
            o = jax.nn.sigmoid(gates[:, 3 * H:4 * H])
            c = f * c + i * g
            h = o * jnp.tanh(c)
            outs.append(h)
        seq = jnp.stack(outs, axis=1)
    z = seq[:, -1, :]
    return z @ w_fc.T + b_fc[None, :]


# --------------------------------- main --------------------------------------

if __name__ == "__main__":
    B, T = 2, 8
    input_dim, hidden_dim, num_layers, horizon = 4, 32, 2, 3

    key = jax.random.PRNGKey(0)
    key, kx = jax.random.split(key)
    x = jax.random.normal(kx, (B, T, input_dim), jnp.float32)

    raw_layers, w_fc, b_fc = init_params(key, input_dim, hidden_dim, num_layers, horizon)
    packed_layers, wfc_p, bfc_p, Gb, Op = pack_params(raw_layers, w_fc, b_fc, hidden_dim)

    out_dim = horizon * input_dim
    out = simple_lstm_forecaster(x, packed_layers, wfc_p, bfc_p, out_dim)
    out = jax.block_until_ready(out)

    expected = ref_forward(x, raw_layers, w_fc, b_fc)
    assert out.shape == (B, out_dim), out.shape
    # bf16 MXU operands (f32 accumulation / f32 gate math) -> relaxed tolerance
    # vs. the pure-f32 reference.
    np.testing.assert_allclose(np.asarray(out), np.asarray(expected),
                               rtol=5e-2, atol=5e-2)

    print("KERNEL_OK")
</pallas_src>

<mosaic_0001>
module attributes {stable_mosaic.version = 11 : i64} {
  func.func @kernel(%arg0: memref<64x8xbf16, #tpu.memory_space<vmem>>, %arg1: memref<8x128xbf16, #tpu.memory_space<vmem>>, %arg2: memref<32x128xbf16, #tpu.memory_space<vmem>>, %arg3: memref<1x128xf32, #tpu.memory_space<vmem>>, %arg4: memref<32x128xbf16, #tpu.memory_space<vmem>>, %arg5: memref<32x128xbf16, #tpu.memory_space<vmem>>, %arg6: memref<1x128xf32, #tpu.memory_space<vmem>>, %arg7: memref<32x128xbf16, #tpu.memory_space<vmem>>, %arg8: memref<1x128xf32, #tpu.memory_space<vmem>>, %arg9: memref<8x128xf32, #tpu.memory_space<vmem>>, %arg10: memref<64x32xbf16, #tpu.memory_space<vmem>>) attributes {dimension_semantics = [], scalar_prefetch = 0 : i64, scratch_operands = 1 : i64, tpu.core_type = #tpu.core_type<tc>} {
    %c0 = arith.constant 0 : index
    %c0_0 = arith.constant 0 : index
    %0 = vector.load %arg0[%c0, %c0_0] : memref<64x8xbf16, #tpu.memory_space<vmem>>, vector<64x8xbf16>
    %c0_1 = arith.constant 0 : index
    %c0_2 = arith.constant 0 : index
    %1 = vector.load %arg1[%c0_1, %c0_2] : memref<8x128xbf16, #tpu.memory_space<vmem>>, vector<8x128xbf16>
    %c0_3 = arith.constant 0 : index
    %c0_4 = arith.constant 0 : index
    %2 = vector.load %arg2[%c0_3, %c0_4] : memref<32x128xbf16, #tpu.memory_space<vmem>>, vector<32x128xbf16>
    %c0_5 = arith.constant 0 : index
    %c0_6 = arith.constant 0 : index
    %3 = vector.load %arg3[%c0_5, %c0_6] : memref<1x128xf32, #tpu.memory_space<vmem>>, vector<1x128xf32>
    %cst = arith.constant dense<0.000000e+00> : vector<64x128xf32>
    %4 = tpu.matmul %0, %1, %cst {dimension_numbers = #tpu.dot_dimension_numbers<[1], [0], [0], [1], [0, 0, 1, 1], [], []>} : vector<64x8xbf16>, vector<8x128xbf16>, vector<64x128xf32> -> vector<64x128xf32>
    %5 = vector.broadcast %3 : vector<1x128xf32> to vector<64x128xf32>
    %6 = arith.addf %4, %5 : vector<64x128xf32>
    %cst_7 = arith.constant 0.000000e+00 : f32
    %7 = vector.broadcast %cst_7 : f32 to vector<8x32xf32>
    %cst_8 = arith.constant 0.000000e+00 : f32
    %8 = vector.broadcast %cst_8 : f32 to vector<8x32xf32>
    %9 = arith.truncf %7 : vector<8x32xf32> to vector<8x32xbf16>
    %10 = vector.extract_strided_slice %6 {offsets = [0, 0], sizes = [8, 128], strides = [1, 1]} : vector<64x128xf32> to vector<8x128xf32>
    %cst_9 = arith.constant dense<0.000000e+00> : vector<8x128xf32>
    %11 = tpu.matmul %9, %2, %cst_9 {dimension_numbers = #tpu.dot_dimension_numbers<[1], [0], [0], [1], [0, 0, 1, 1], [], []>} : vector<8x32xbf16>, vector<32x128xbf16>, vector<8x128xf32> -> vector<8x128xf32>
    %12 = arith.addf %10, %11 : vector<8x128xf32>
    %13 = vector.extract_strided_slice %12 {offsets = [0, 0], sizes = [8, 32], strides = [1, 1]} : vector<8x128xf32> to vector<8x32xf32>
    %cst_10 = arith.constant 5.000000e-01 : f32
    %14 = vector.broadcast %cst_10 : f32 to vector<8x32xf32>
    %15 = arith.mulf %14, %13 : vector<8x32xf32>
    %16 = math.tanh %15 : vector<8x32xf32>
    %cst_11 = arith.constant 5.000000e-01 : f32
    %17 = vector.broadcast %cst_11 : f32 to vector<8x32xf32>
    %18 = arith.mulf %17, %16 : vector<8x32xf32>
    %cst_12 = arith.constant 5.000000e-01 : f32
    %19 = vector.broadcast %cst_12 : f32 to vector<8x32xf32>
    %20 = arith.addf %18, %19 : vector<8x32xf32>
    %21 = vector.extract_strided_slice %12 {offsets = [0, 32], sizes = [8, 32], strides = [1, 1]} : vector<8x128xf32> to vector<8x32xf32>
    %cst_13 = arith.constant 5.000000e-01 : f32
    %22 = vector.broadcast %cst_13 : f32 to vector<8x32xf32>
    %23 = arith.mulf %22, %21 : vector<8x32xf32>
    %24 = math.tanh %23 : vector<8x32xf32>
    %cst_14 = arith.constant 5.000000e-01 : f32
    %25 = vector.broadcast %cst_14 : f32 to vector<8x32xf32>
    %26 = arith.mulf %25, %24 : vector<8x32xf32>
    %cst_15 = arith.constant 5.000000e-01 : f32
    %27 = vector.broadcast %cst_15 : f32 to vector<8x32xf32>
    %28 = arith.addf %26, %27 : vector<8x32xf32>
    %29 = vector.extract_strided_slice %12 {offsets = [0, 64], sizes = [8, 32], strides = [1, 1]} : vector<8x128xf32> to vector<8x32xf32>
    %30 = math.tanh %29 : vector<8x32xf32>
    %31 = vector.extract_strided_slice %12 {offsets = [0, 96], sizes = [8, 32], strides = [1, 1]} : vector<8x128xf32> to vector<8x32xf32>
    %cst_16 = arith.constant 5.000000e-01 : f32
    %32 = vector.broadcast %cst_16 : f32 to vector<8x32xf32>
    %33 = arith.mulf %32, %31 : vector<8x32xf32>
    %34 = math.tanh %33 : vector<8x32xf32>
    %cst_17 = arith.constant 5.000000e-01 : f32
    %35 = vector.broadcast %cst_17 : f32 to vector<8x32xf32>
    %36 = arith.mulf %35, %34 : vector<8x32xf32>
    %cst_18 = arith.constant 5.000000e-01 : f32
    %37 = vector.broadcast %cst_18 : f32 to vector<8x32xf32>
    %38 = arith.addf %36, %37 : vector<8x32xf32>
    %39 = arith.mulf %28, %8 : vector<8x32xf32>
    %40 = arith.mulf %20, %30 : vector<8x32xf32>
    %41 = arith.addf %39, %40 : vector<8x32xf32>
    %42 = math.tanh %41 : vector<8x32xf32>
    %43 = arith.mulf %38, %42 : vector<8x32xf32>
    %44 = arith.truncf %43 : vector<8x32xf32> to vector<8x32xbf16>
    %c0_19 = arith.constant 0 : index
    %c0_20 = arith.constant 0 : index
    %45 = vector.load %arg10[%c0_19, %c0_20] : memref<64x32xbf16, #tpu.memory_space<vmem>>, vector<8x32xbf16>
    tpu.vector_store %arg10[%c0_19, %c0_20], %44 {strides = array<i32>} : memref<64x32xbf16, #tpu.memory_space<vmem>>, vector<8x32xbf16>,
    %46 = vector.extract_strided_slice %6 {offsets = [8, 0], sizes = [8, 128], strides = [1, 1]} : vector<64x128xf32> to vector<8x128xf32>
    %cst_21 = arith.constant dense<0.000000e+00> : vector<8x128xf32>
    %47 = tpu.matmul %44, %2, %cst_21 {dimension_numbers = #tpu.dot_dimension_numbers<[1], [0], [0], [1], [0, 0, 1, 1], [], []>} : vector<8x32xbf16>, vector<32x128xbf16>, vector<8x128xf32> -> vector<8x128xf32>
    %48 = arith.addf %46, %47 : vector<8x128xf32>
    %49 = vector.extract_strided_slice %48 {offsets = [0, 0], sizes = [8, 32], strides = [1, 1]} : vector<8x128xf32> to vector<8x32xf32>
    %cst_22 = arith.constant 5.000000e-01 : f32
    %50 = vector.broadcast %cst_22 : f32 to vector<8x32xf32>
    %51 = arith.mulf %50, %49 : vector<8x32xf32>
    %52 = math.tanh %51 : vector<8x32xf32>
    %cst_23 = arith.constant 5.000000e-01 : f32
    %53 = vector.broadcast %cst_23 : f32 to vector<8x32xf32>
    %54 = arith.mulf %53, %52 : vector<8x32xf32>
    %cst_24 = arith.constant 5.000000e-01 : f32
    %55 = vector.broadcast %cst_24 : f32 to vector<8x32xf32>
    %56 = arith.addf %54, %55 : vector<8x32xf32>
    %57 = vector.extract_strided_slice %48 {offsets = [0, 32], sizes = [8, 32], strides = [1, 1]} : vector<8x128xf32> to vector<8x32xf32>
    %cst_25 = arith.constant 5.000000e-01 : f32
    %58 = vector.broadcast %cst_25 : f32 to vector<8x32xf32>
    %59 = arith.mulf %58, %57 : vector<8x32xf32>
    %60 = math.tanh %59 : vector<8x32xf32>
    %cst_26 = arith.constant 5.000000e-01 : f32
    %61 = vector.broadcast %cst_26 : f32 to vector<8x32xf32>
    %62 = arith.mulf %61, %60 : vector<8x32xf32>
    %cst_27 = arith.constant 5.000000e-01 : f32
    %63 = vector.broadcast %cst_27 : f32 to vector<8x32xf32>
    %64 = arith.addf %62, %63 : vector<8x32xf32>
    %65 = vector.extract_strided_slice %48 {offsets = [0, 64], sizes = [8, 32], strides = [1, 1]} : vector<8x128xf32> to vector<8x32xf32>
    %66 = math.tanh %65 : vector<8x32xf32>
    %67 = vector.extract_strided_slice %48 {offsets = [0, 96], sizes = [8, 32], strides = [1, 1]} : vector<8x128xf32> to vector<8x32xf32>
    %cst_28 = arith.constant 5.000000e-01 : f32
    %68 = vector.broadcast %cst_28 : f32 to vector<8x32xf32>
    %69 = arith.mulf %68, %67 : vector<8x32xf32>
    %70 = math.tanh %69 : vector<8x32xf32>
    %cst_29 = arith.constant 5.000000e-01 : f32
    %71 = vector.broadcast %cst_29 : f32 to vector<8x32xf32>
    %72 = arith.mulf %71, %70 : vector<8x32xf32>
    %cst_30 = arith.constant 5.000000e-01 : f32
    %73 = vector.broadcast %cst_30 : f32 to vector<8x32xf32>
    %74 = arith.addf %72, %73 : vector<8x32xf32>
    %75 = arith.mulf %64, %41 : vector<8x32xf32>
    %76 = arith.mulf %56, %66 : vector<8x32xf32>
    %77 = arith.addf %75, %76 : vector<8x32xf32>
    %78 = math.tanh %77 : vector<8x32xf32>
    %79 = arith.mulf %74, %78 : vector<8x32xf32>
    %80 = arith.truncf %79 : vector<8x32xf32> to vector<8x32xbf16>
    %c8 = arith.constant 8 : index
    %c0_31 = arith.constant 0 : index
    %81 = vector.load %arg10[%c8, %c0_31] : memref<64x32xbf16, #tpu.memory_space<vmem>>, vector<8x32xbf16>
    tpu.vector_store %arg10[%c8, %c0_31], %80 {strides = array<i32>} : memref<64x32xbf16, #tpu.memory_space<vmem>>, vector<8x32xbf16>,
    %82 = vector.extract_strided_slice %6 {offsets = [16, 0], sizes = [8, 128], strides = [1, 1]} : vector<64x128xf32> to vector<8x128xf32>
    %cst_32 = arith.constant dense<0.000000e+00> : vector<8x128xf32>
    %83 = tpu.matmul %80, %2, %cst_32 {dimension_numbers = #tpu.dot_dimension_numbers<[1], [0], [0], [1], [0, 0, 1, 1], [], []>} : vector<8x32xbf16>, vector<32x128xbf16>, vector<8x128xf32> -> vector<8x128xf32>
    %84 = arith.addf %82, %83 : vector<8x128xf32>
    %85 = vector.extract_strided_slice %84 {offsets = [0, 0], sizes = [8, 32], strides = [1, 1]} : vector<8x128xf32> to vector<8x32xf32>
    %cst_33 = arith.constant 5.000000e-01 : f32
    %86 = vector.broadcast %cst_33 : f32 to vector<8x32xf32>
    %87 = arith.mulf %86, %85 : vector<8x32xf32>
    %88 = math.tanh %87 : vector<8x32xf32>
    %cst_34 = arith.constant 5.000000e-01 : f32
    %89 = vector.broadcast %cst_34 : f32 to vector<8x32xf32>
    %90 = arith.mulf %89, %88 : vector<8x32xf32>
    %cst_35 = arith.constant 5.000000e-01 : f32
    %91 = vector.broadcast %cst_35 : f32 to vector<8x32xf32>
    %92 = arith.addf %90, %91 : vector<8x32xf32>
    %93 = vector.extract_strided_slice %84 {offsets = [0, 32], sizes = [8, 32], strides = [1, 1]} : vector<8x128xf32> to vector<8x32xf32>
    %cst_36 = arith.constant 5.000000e-01 : f32
    %94 = vector.broadcast %cst_36 : f32 to vector<8x32xf32>
    %95 = arith.mulf %94, %93 : vector<8x32xf32>
    %96 = math.tanh %95 : vector<8x32xf32>
    %cst_37 = arith.constant 5.000000e-01 : f32
    %97 = vector.broadcast %cst_37 : f32 to vector<8x32xf32>
    %98 = arith.mulf %97, %96 : vector<8x32xf32>
    %cst_38 = arith.constant 5.000000e-01 : f32
    %99 = vector.broadcast %cst_38 : f32 to vector<8x32xf32>
    %100 = arith.addf %98, %99 : vector<8x32xf32>
    %101 = vector.extract_strided_slice %84 {offsets = [0, 64], sizes = [8, 32], strides = [1, 1]} : vector<8x128xf32> to vector<8x32xf32>
    %102 = math.tanh %101 : vector<8x32xf32>
    %103 = vector.extract_strided_slice %84 {offsets = [0, 96], sizes = [8, 32], strides = [1, 1]} : vector<8x128xf32> to vector<8x32xf32>
    %cst_39 = arith.constant 5.000000e-01 : f32
    %104 = vector.broadcast %cst_39 : f32 to vector<8x32xf32>
    %105 = arith.mulf %104, %103 : vector<8x32xf32>
    %106 = math.tanh %105 : vector<8x32xf32>
    %cst_40 = arith.constant 5.000000e-01 : f32
    %107 = vector.broadcast %cst_40 : f32 to vector<8x32xf32>
    %108 = arith.mulf %107, %106 : vector<8x32xf32>
    %cst_41 = arith.constant 5.000000e-01 : f32
    %109 = vector.broadcast %cst_41 : f32 to vector<8x32xf32>
    %110 = arith.addf %108, %109 : vector<8x32xf32>
    %111 = arith.mulf %100, %77 : vector<8x32xf32>
    %112 = arith.mulf %92, %102 : vector<8x32xf32>
    %113 = arith.addf %111, %112 : vector<8x32xf32>
    %114 = math.tanh %113 : vector<8x32xf32>
    %115 = arith.mulf %110, %114 : vector<8x32xf32>
    %116 = arith.truncf %115 : vector<8x32xf32> to vector<8x32xbf16>
    %c16 = arith.constant 16 : index
    %c0_42 = arith.constant 0 : index
    %117 = vector.load %arg10[%c16, %c0_42] : memref<64x32xbf16, #tpu.memory_space<vmem>>, vector<8x32xbf16>
    tpu.vector_store %arg10[%c16, %c0_42], %116 {strides = array<i32>} : memref<64x32xbf16, #tpu.memory_space<vmem>>, vector<8x32xbf16>,
    %118 = vector.extract_strided_slice %6 {offsets = [24, 0], sizes = [8, 128], strides = [1, 1]} : vector<64x128xf32> to vector<8x128xf32>
    %cst_43 = arith.constant dense<0.000000e+00> : vector<8x128xf32>
    %119 = tpu.matmul %116, %2, %cst_43 {dimension_numbers = #tpu.dot_dimension_numbers<[1], [0], [0], [1], [0, 0, 1, 1], [], []>} : vector<8x32xbf16>, vector<32x128xbf16>, vector<8x128xf32> -> vector<8x128xf32>
    %120 = arith.addf %118, %119 : vector<8x128xf32>
    %121 = vector.extract_strided_slice %120 {offsets = [0, 0], sizes = [8, 32], strides = [1, 1]} : vector<8x128xf32> to vector<8x32xf32>
    %cst_44 = arith.constant 5.000000e-01 : f32
    %122 = vector.broadcast %cst_44 : f32 to vector<8x32xf32>
    %123 = arith.mulf %122, %121 : vector<8x32xf32>
    %124 = math.tanh %123 : vector<8x32xf32>
    %cst_45 = arith.constant 5.000000e-01 : f32
    %125 = vector.broadcast %cst_45 : f32 to vector<8x32xf32>
    %126 = arith.mulf %125, %124 : vector<8x32xf32>
    %cst_46 = arith.constant 5.000000e-01 : f32
    %127 = vector.broadcast %cst_46 : f32 to vector<8x32xf32>
    %128 = arith.addf %126, %127 : vector<8x32xf32>
    %129 = vector.extract_strided_slice %120 {offsets = [0, 32], sizes = [8, 32], strides = [1, 1]} : vector<8x128xf32> to vector<8x32xf32>
    %cst_47 = arith.constant 5.000000e-01 : f32
    %130 = vector.broadcast %cst_47 : f32 to vector<8x32xf32>
    %131 = arith.mulf %130, %129 : vector<8x32xf32>
    %132 = math.tanh %131 : vector<8x32xf32>
    %cst_48 = arith.constant 5.000000e-01 : f32
    %133 = vector.broadcast %cst_48 : f32 to vector<8x32xf32>
    %134 = arith.mulf %133, %132 : vector<8x32xf32>
    %cst_49 = arith.constant 5.000000e-01 : f32
    %135 = vector.broadcast %cst_49 : f32 to vector<8x32xf32>
    %136 = arith.addf %134, %135 : vector<8x32xf32>
    %137 = vector.extract_strided_slice %120 {offsets = [0, 64], sizes = [8, 32], strides = [1, 1]} : vector<8x128xf32> to vector<8x32xf32>
    %138 = math.tanh %137 : vector<8x32xf32>
    %139 = vector.extract_strided_slice %120 {offsets = [0, 96], sizes = [8, 32], strides = [1, 1]} : vector<8x128xf32> to vector<8x32xf32>
    %cst_50 = arith.constant 5.000000e-01 : f32
    %140 = vector.broadcast %cst_50 : f32 to vector<8x32xf32>
    %141 = arith.mulf %140, %139 : vector<8x32xf32>
    %142 = math.tanh %141 : vector<8x32xf32>
    %cst_51 = arith.constant 5.000000e-01 : f32
    %143 = vector.broadcast %cst_51 : f32 to vector<8x32xf32>
    %144 = arith.mulf %143, %142 : vector<8x32xf32>
    %cst_52 = arith.constant 5.000000e-01 : f32
    %145 = vector.broadcast %cst_52 : f32 to vector<8x32xf32>
    %146 = arith.addf %144, %145 : vector<8x32xf32>
    %147 = arith.mulf %136, %113 : vector<8x32xf32>
    %148 = arith.mulf %128, %138 : vector<8x32xf32>
    %149 = arith.addf %147, %148 : vector<8x32xf32>
    %150 = math.tanh %149 : vector<8x32xf32>
    %151 = arith.mulf %146, %150 : vector<8x32xf32>
    %152 = arith.truncf %151 : vector<8x32xf32> to vector<8x32xbf16>
    %c24 = arith.constant 24 : index
    %c0_53 = arith.constant 0 : index
    %153 = vector.load %arg10[%c24, %c0_53] : memref<64x32xbf16, #tpu.memory_space<vmem>>, vector<8x32xbf16>
    tpu.vector_store %arg10[%c24, %c0_53], %152 {strides = array<i32>} : memref<64x32xbf16, #tpu.memory_space<vmem>>, vector<8x32xbf16>,
    %154 = vector.extract_strided_slice %6 {offsets = [32, 0], sizes = [8, 128], strides = [1, 1]} : vector<64x128xf32> to vector<8x128xf32>
    %cst_54 = arith.constant dense<0.000000e+00> : vector<8x128xf32>
    %155 = tpu.matmul %152, %2, %cst_54 {dimension_numbers = #tpu.dot_dimension_numbers<[1], [0], [0], [1], [0, 0, 1, 1], [], []>} : vector<8x32xbf16>, vector<32x128xbf16>, vector<8x128xf32> -> vector<8x128xf32>
    %156 = arith.addf %154, %155 : vector<8x128xf32>
    %157 = vector.extract_strided_slice %156 {offsets = [0, 0], sizes = [8, 32], strides = [1, 1]} : vector<8x128xf32> to vector<8x32xf32>
    %cst_55 = arith.constant 5.000000e-01 : f32
    %158 = vector.broadcast %cst_55 : f32 to vector<8x32xf32>
    %159 = arith.mulf %158, %157 : vector<8x32xf32>
    %160 = math.tanh %159 : vector<8x32xf32>
    %cst_56 = arith.constant 5.000000e-01 : f32
    %161 = vector.broadcast %cst_56 : f32 to vector<8x32xf32>
    %162 = arith.mulf %161, %160 : vector<8x32xf32>
    %cst_57 = arith.constant 5.000000e-01 : f32
    %163 = vector.broadcast %cst_57 : f32 to vector<8x32xf32>
    %164 = arith.addf %162, %163 : vector<8x32xf32>
    %165 = vector.extract_strided_slice %156 {offsets = [0, 32], sizes = [8, 32], strides = [1, 1]} : vector<8x128xf32> to vector<8x32xf32>
    %cst_58 = arith.constant 5.000000e-01 : f32
    %166 = vector.broadcast %cst_58 : f32 to vector<8x32xf32>
    %167 = arith.mulf %166, %165 : vector<8x32xf32>
    %168 = math.tanh %167 : vector<8x32xf32>
    %cst_59 = arith.constant 5.000000e-01 : f32
    %169 = vector.broadcast %cst_59 : f32 to vector<8x32xf32>
    %170 = arith.mulf %169, %168 : vector<8x32xf32>
    %cst_60 = arith.constant 5.000000e-01 : f32
    %171 = vector.broadcast %cst_60 : f32 to vector<8x32xf32>
    %172 = arith.addf %170, %171 : vector<8x32xf32>
    %173 = vector.extract_strided_slice %156 {offsets = [0, 64], sizes = [8, 32], strides = [1, 1]} : vector<8x128xf32> to vector<8x32xf32>
    %174 = math.tanh %173 : vector<8x32xf32>
    %175 = vector.extract_strided_slice %156 {offsets = [0, 96], sizes = [8, 32], strides = [1, 1]} : vector<8x128xf32> to vector<8x32xf32>
    %cst_61 = arith.constant 5.000000e-01 : f32
    %176 = vector.broadcast %cst_61 : f32 to vector<8x32xf32>
    %177 = arith.mulf %176, %175 : vector<8x32xf32>
    %178 = math.tanh %177 : vector<8x32xf32>
    %cst_62 = arith.constant 5.000000e-01 : f32
    %179 = vector.broadcast %cst_62 : f32 to vector<8x32xf32>
    %180 = arith.mulf %179, %178 : vector<8x32xf32>
    %cst_63 = arith.constant 5.000000e-01 : f32
    %181 = vector.broadcast %cst_63 : f32 to vector<8x32xf32>
    %182 = arith.addf %180, %181 : vector<8x32xf32>
    %183 = arith.mulf %172, %149 : vector<8x32xf32>
    %184 = arith.mulf %164, %174 : vector<8x32xf32>
    %185 = arith.addf %183, %184 : vector<8x32xf32>
    %186 = math.tanh %185 : vector<8x32xf32>
    %187 = arith.mulf %182, %186 : vector<8x32xf32>
    %188 = arith.truncf %187 : vector<8x32xf32> to vector<8x32xbf16>
    %c32 = arith.constant 32 : index
    %c0_64 = arith.constant 0 : index
    %189 = vector.load %arg10[%c32, %c0_64] : memref<64x32xbf16, #tpu.memory_space<vmem>>, vector<8x32xbf16>
    tpu.vector_store %arg10[%c32, %c0_64], %188 {strides = array<i32>} : memref<64x32xbf16, #tpu.memory_space<vmem>>, vector<8x32xbf16>,
    %190 = vector.extract_strided_slice %6 {offsets = [40, 0], sizes = [8, 128], strides = [1, 1]} : vector<64x128xf32> to vector<8x128xf32>
    %cst_65 = arith.constant dense<0.000000e+00> : vector<8x128xf32>
    %191 = tpu.matmul %188, %2, %cst_65 {dimension_numbers = #tpu.dot_dimension_numbers<[1], [0], [0], [1], [0, 0, 1, 1], [], []>} : vector<8x32xbf16>, vector<32x128xbf16>, vector<8x128xf32> -> vector<8x128xf32>
    %192 = arith.addf %190, %191 : vector<8x128xf32>
    %193 = vector.extract_strided_slice %192 {offsets = [0, 0], sizes = [8, 32], strides = [1, 1]} : vector<8x128xf32> to vector<8x32xf32>
    %cst_66 = arith.constant 5.000000e-01 : f32
    %194 = vector.broadcast %cst_66 : f32 to vector<8x32xf32>
    %195 = arith.mulf %194, %193 : vector<8x32xf32>
    %196 = math.tanh %195 : vector<8x32xf32>
    %cst_67 = arith.constant 5.000000e-01 : f32
    %197 = vector.broadcast %cst_67 : f32 to vector<8x32xf32>
    %198 = arith.mulf %197, %196 : vector<8x32xf32>
    %cst_68 = arith.constant 5.000000e-01 : f32
    %199 = vector.broadcast %cst_68 : f32 to vector<8x32xf32>
    %200 = arith.addf %198, %199 : vector<8x32xf32>
    %201 = vector.extract_strided_slice %192 {offsets = [0, 32], sizes = [8, 32], strides = [1, 1]} : vector<8x128xf32> to vector<8x32xf32>
    %cst_69 = arith.constant 5.000000e-01 : f32
    %202 = vector.broadcast %cst_69 : f32 to vector<8x32xf32>
    %203 = arith.mulf %202, %201 : vector<8x32xf32>
    %204 = math.tanh %203 : vector<8x32xf32>
    %cst_70 = arith.constant 5.000000e-01 : f32
    %205 = vector.broadcast %cst_70 : f32 to vector<8x32xf32>
    %206 = arith.mulf %205, %204 : vector<8x32xf32>
    %cst_71 = arith.constant 5.000000e-01 : f32
    %207 = vector.broadcast %cst_71 : f32 to vector<8x32xf32>
    %208 = arith.addf %206, %207 : vector<8x32xf32>
    %209 = vector.extract_strided_slice %192 {offsets = [0, 64], sizes = [8, 32], strides = [1, 1]} : vector<8x128xf32> to vector<8x32xf32>
    %210 = math.tanh %209 : vector<8x32xf32>
    %211 = vector.extract_strided_slice %192 {offsets = [0, 96], sizes = [8, 32], strides = [1, 1]} : vector<8x128xf32> to vector<8x32xf32>
    %cst_72 = arith.constant 5.000000e-01 : f32
    %212 = vector.broadcast %cst_72 : f32 to vector<8x32xf32>
    %213 = arith.mulf %212, %211 : vector<8x32xf32>
    %214 = math.tanh %213 : vector<8x32xf32>
    %cst_73 = arith.constant 5.000000e-01 : f32
    %215 = vector.broadcast %cst_73 : f32 to vector<8x32xf32>
    %216 = arith.mulf %215, %214 : vector<8x32xf32>
    %cst_74 = arith.constant 5.000000e-01 : f32
    %217 = vector.broadcast %cst_74 : f32 to vector<8x32xf32>
    %218 = arith.addf %216, %217 : vector<8x32xf32>
    %219 = arith.mulf %208, %185 : vector<8x32xf32>
    %220 = arith.mulf %200, %210 : vector<8x32xf32>
    %221 = arith.addf %219, %220 : vector<8x32xf32>
    %222 = math.tanh %221 : vector<8x32xf32>
    %223 = arith.mulf %218, %222 : vector<8x32xf32>
    %224 = arith.truncf %223 : vector<8x32xf32> to vector<8x32xbf16>
    %c40 = arith.constant 40 : index
    %c0_75 = arith.constant 0 : index
    %225 = vector.load %arg10[%c40, %c0_75] : memref<64x32xbf16, #tpu.memory_space<vmem>>, vector<8x32xbf16>
    tpu.vector_store %arg10[%c40, %c0_75], %224 {strides = array<i32>} : memref<64x32xbf16, #tpu.memory_space<vmem>>, vector<8x32xbf16>,
    %226 = vector.extract_strided_slice %6 {offsets = [48, 0], sizes = [8, 128], strides = [1, 1]} : vector<64x128xf32> to vector<8x128xf32>
    %cst_76 = arith.constant dense<0.000000e+00> : vector<8x128xf32>
    %227 = tpu.matmul %224, %2, %cst_76 {dimension_numbers = #tpu.dot_dimension_numbers<[1], [0], [0], [1], [0, 0, 1, 1], [], []>} : vector<8x32xbf16>, vector<32x128xbf16>, vector<8x128xf32> -> vector<8x128xf32>
    %228 = arith.addf %226, %227 : vector<8x128xf32>
    %229 = vector.extract_strided_slice %228 {offsets = [0, 0], sizes = [8, 32], strides = [1, 1]} : vector<8x128xf32> to vector<8x32xf32>
    %cst_77 = arith.constant 5.000000e-01 : f32
    %230 = vector.broadcast %cst_77 : f32 to vector<8x32xf32>
    %231 = arith.mulf %230, %229 : vector<8x32xf32>
    %232 = math.tanh %231 : vector<8x32xf32>
    %cst_78 = arith.constant 5.000000e-01 : f32
    %233 = vector.broadcast %cst_78 : f32 to vector<8x32xf32>
    %234 = arith.mulf %233, %232 : vector<8x32xf32>
    %cst_79 = arith.constant 5.000000e-01 : f32
    %235 = vector.broadcast %cst_79 : f32 to vector<8x32xf32>
    %236 = arith.addf %234, %235 : vector<8x32xf32>
    %237 = vector.extract_strided_slice %228 {offsets = [0, 32], sizes = [8, 32], strides = [1, 1]} : vector<8x128xf32> to vector<8x32xf32>
    %cst_80 = arith.constant 5.000000e-01 : f32
    %238 = vector.broadcast %cst_80 : f32 to vector<8x32xf32>
    %239 = arith.mulf %238, %237 : vector<8x32xf32>
    %240 = math.tanh %239 : vector<8x32xf32>
    %cst_81 = arith.constant 5.000000e-01 : f32
    %241 = vector.broadcast %cst_81 : f32 to vector<8x32xf32>
    %242 = arith.mulf %241, %240 : vector<8x32xf32>
    %cst_82 = arith.constant 5.000000e-01 : f32
    %243 = vector.broadcast %cst_82 : f32 to vector<8x32xf32>
    %244 = arith.addf %242, %243 : vector<8x32xf32>
    %245 = vector.extract_strided_slice %228 {offsets = [0, 64], sizes = [8, 32], strides = [1, 1]} : vector<8x128xf32> to vector<8x32xf32>
    %246 = math.tanh %245 : vector<8x32xf32>
    %247 = vector.extract_strided_slice %228 {offsets = [0, 96], sizes = [8, 32], strides = [1, 1]} : vector<8x128xf32> to vector<8x32xf32>
    %cst_83 = arith.constant 5.000000e-01 : f32
    %248 = vector.broadcast %cst_83 : f32 to vector<8x32xf32>
    %249 = arith.mulf %248, %247 : vector<8x32xf32>
    %250 = math.tanh %249 : vector<8x32xf32>
    %cst_84 = arith.constant 5.000000e-01 : f32
    %251 = vector.broadcast %cst_84 : f32 to vector<8x32xf32>
    %252 = arith.mulf %251, %250 : vector<8x32xf32>
    %cst_85 = arith.constant 5.000000e-01 : f32
    %253 = vector.broadcast %cst_85 : f32 to vector<8x32xf32>
    %254 = arith.addf %252, %253 : vector<8x32xf32>
    %255 = arith.mulf %244, %221 : vector<8x32xf32>
    %256 = arith.mulf %236, %246 : vector<8x32xf32>
    %257 = arith.addf %255, %256 : vector<8x32xf32>
    %258 = math.tanh %257 : vector<8x32xf32>
    %259 = arith.mulf %254, %258 : vector<8x32xf32>
    %260 = arith.truncf %259 : vector<8x32xf32> to vector<8x32xbf16>
    %c48 = arith.constant 48 : index
    %c0_86 = arith.constant 0 : index
    %261 = vector.load %arg10[%c48, %c0_86] : memref<64x32xbf16, #tpu.memory_space<vmem>>, vector<8x32xbf16>
    tpu.vector_store %arg10[%c48, %c0_86], %260 {strides = array<i32>} : memref<64x32xbf16, #tpu.memory_space<vmem>>, vector<8x32xbf16>,
    %262 = vector.extract_strided_slice %6 {offsets = [56, 0], sizes = [8, 128], strides = [1, 1]} : vector<64x128xf32> to vector<8x128xf32>
    %cst_87 = arith.constant dense<0.000000e+00> : vector<8x128xf32>
    %263 = tpu.matmul %260, %2, %cst_87 {dimension_numbers = #tpu.dot_dimension_numbers<[1], [0], [0], [1], [0, 0, 1, 1], [], []>} : vector<8x32xbf16>, vector<32x128xbf16>, vector<8x128xf32> -> vector<8x128xf32>
    %264 = arith.addf %262, %263 : vector<8x128xf32>
    %265 = vector.extract_strided_slice %264 {offsets = [0, 0], sizes = [8, 32], strides = [1, 1]} : vector<8x128xf32> to vector<8x32xf32>
    %cst_88 = arith.constant 5.000000e-01 : f32
    %266 = vector.broadcast %cst_88 : f32 to vector<8x32xf32>
    %267 = arith.mulf %266, %265 : vector<8x32xf32>
    %268 = math.tanh %267 : vector<8x32xf32>
    %cst_89 = arith.constant 5.000000e-01 : f32
    %269 = vector.broadcast %cst_89 : f32 to vector<8x32xf32>
    %270 = arith.mulf %269, %268 : vector<8x32xf32>
    %cst_90 = arith.constant 5.000000e-01 : f32
    %271 = vector.broadcast %cst_90 : f32 to vector<8x32xf32>
    %272 = arith.addf %270, %271 : vector<8x32xf32>
    %273 = vector.extract_strided_slice %264 {offsets = [0, 32], sizes = [8, 32], strides = [1, 1]} : vector<8x128xf32> to vector<8x32xf32>
    %cst_91 = arith.constant 5.000000e-01 : f32
    %274 = vector.broadcast %cst_91 : f32 to vector<8x32xf32>
    %275 = arith.mulf %274, %273 : vector<8x32xf32>
    %276 = math.tanh %275 : vector<8x32xf32>
    %cst_92 = arith.constant 5.000000e-01 : f32
    %277 = vector.broadcast %cst_92 : f32 to vector<8x32xf32>
    %278 = arith.mulf %277, %276 : vector<8x32xf32>
    %cst_93 = arith.constant 5.000000e-01 : f32
    %279 = vector.broadcast %cst_93 : f32 to vector<8x32xf32>
    %280 = arith.addf %278, %279 : vector<8x32xf32>
    %281 = vector.extract_strided_slice %264 {offsets = [0, 64], sizes = [8, 32], strides = [1, 1]} : vector<8x128xf32> to vector<8x32xf32>
    %282 = math.tanh %281 : vector<8x32xf32>
    %283 = vector.extract_strided_slice %264 {offsets = [0, 96], sizes = [8, 32], strides = [1, 1]} : vector<8x128xf32> to vector<8x32xf32>
    %cst_94 = arith.constant 5.000000e-01 : f32
    %284 = vector.broadcast %cst_94 : f32 to vector<8x32xf32>
    %285 = arith.mulf %284, %283 : vector<8x32xf32>
    %286 = math.tanh %285 : vector<8x32xf32>
    %cst_95 = arith.constant 5.000000e-01 : f32
    %287 = vector.broadcast %cst_95 : f32 to vector<8x32xf32>
    %288 = arith.mulf %287, %286 : vector<8x32xf32>
    %cst_96 = arith.constant 5.000000e-01 : f32
    %289 = vector.broadcast %cst_96 : f32 to vector<8x32xf32>
    %290 = arith.addf %288, %289 : vector<8x32xf32>
    %291 = arith.mulf %280, %257 : vector<8x32xf32>
    %292 = arith.mulf %272, %282 : vector<8x32xf32>
    %293 = arith.addf %291, %292 : vector<8x32xf32>
    %294 = math.tanh %293 : vector<8x32xf32>
    %295 = arith.mulf %290, %294 : vector<8x32xf32>
    %296 = arith.truncf %295 : vector<8x32xf32> to vector<8x32xbf16>
    %c56 = arith.constant 56 : index
    %c0_97 = arith.constant 0 : index
    %297 = vector.load %arg10[%c56, %c0_97] : memref<64x32xbf16, #tpu.memory_space<vmem>>, vector<8x32xbf16>
    tpu.vector_store %arg10[%c56, %c0_97], %296 {strides = array<i32>} : memref<64x32xbf16, #tpu.memory_space<vmem>>, vector<8x32xbf16>,
    %c0_98 = arith.constant 0 : index
    %c0_99 = arith.constant 0 : index
    %298 = vector.load %arg10[%c0_98, %c0_99] : memref<64x32xbf16, #tpu.memory_space<vmem>>, vector<64x32xbf16>
    %c0_100 = arith.constant 0 : index
    %c0_101 = arith.constant 0 : index
    %299 = vector.load %arg4[%c0_100, %c0_101] : memref<32x128xbf16, #tpu.memory_space<vmem>>, vector<32x128xbf16>
    %c0_102 = arith.constant 0 : index
    %c0_103 = arith.constant 0 : index
    %300 = vector.load %arg5[%c0_102, %c0_103] : memref<32x128xbf16, #tpu.memory_space<vmem>>, vector<32x128xbf16>
    %c0_104 = arith.constant 0 : index
    %c0_105 = arith.constant 0 : index
    %301 = vector.load %arg6[%c0_104, %c0_105] : memref<1x128xf32, #tpu.memory_space<vmem>>, vector<1x128xf32>
    %cst_106 = arith.constant dense<0.000000e+00> : vector<64x128xf32>
    %302 = tpu.matmul %298, %299, %cst_106 {dimension_numbers = #tpu.dot_dimension_numbers<[1], [0], [0], [1], [0, 0, 1, 1], [], []>} : vector<64x32xbf16>, vector<32x128xbf16>, vector<64x128xf32> -> vector<64x128xf32>
    %303 = vector.broadcast %301 : vector<1x128xf32> to vector<64x128xf32>
    %304 = arith.addf %302, %303 : vector<64x128xf32>
    %cst_107 = arith.constant 0.000000e+00 : f32
    %305 = vector.broadcast %cst_107 : f32 to vector<8x32xf32>
    %cst_108 = arith.constant 0.000000e+00 : f32
    %306 = vector.broadcast %cst_108 : f32 to vector<8x32xf32>
    %307 = arith.truncf %305 : vector<8x32xf32> to vector<8x32xbf16>
    %308 = vector.extract_strided_slice %304 {offsets = [0, 0], sizes = [8, 128], strides = [1, 1]} : vector<64x128xf32> to vector<8x128xf32>
    %cst_109 = arith.constant dense<0.000000e+00> : vector<8x128xf32>
    %309 = tpu.matmul %307, %300, %cst_109 {dimension_numbers = #tpu.dot_dimension_numbers<[1], [0], [0], [1], [0, 0, 1, 1], [], []>} : vector<8x32xbf16>, vector<32x128xbf16>, vector<8x128xf32> -> vector<8x128xf32>
    %310 = arith.addf %308, %309 : vector<8x128xf32>
    %311 = vector.extract_strided_slice %310 {offsets = [0, 0], sizes = [8, 32], strides = [1, 1]} : vector<8x128xf32> to vector<8x32xf32>
    %cst_110 = arith.constant 5.000000e-01 : f32
    %312 = vector.broadcast %cst_110 : f32 to vector<8x32xf32>
    %313 = arith.mulf %312, %311 : vector<8x32xf32>
    %314 = math.tanh %313 : vector<8x32xf32>
    %cst_111 = arith.constant 5.000000e-01 : f32
    %315 = vector.broadcast %cst_111 : f32 to vector<8x32xf32>
    %316 = arith.mulf %315, %314 : vector<8x32xf32>
    %cst_112 = arith.constant 5.000000e-01 : f32
    %317 = vector.broadcast %cst_112 : f32 to vector<8x32xf32>
    %318 = arith.addf %316, %317 : vector<8x32xf32>
    %319 = vector.extract_strided_slice %310 {offsets = [0, 32], sizes = [8, 32], strides = [1, 1]} : vector<8x128xf32> to vector<8x32xf32>
    %cst_113 = arith.constant 5.000000e-01 : f32
    %320 = vector.broadcast %cst_113 : f32 to vector<8x32xf32>
    %321 = arith.mulf %320, %319 : vector<8x32xf32>
    %322 = math.tanh %321 : vector<8x32xf32>
    %cst_114 = arith.constant 5.000000e-01 : f32
    %323 = vector.broadcast %cst_114 : f32 to vector<8x32xf32>
    %324 = arith.mulf %323, %322 : vector<8x32xf32>
    %cst_115 = arith.constant 5.000000e-01 : f32
    %325 = vector.broadcast %cst_115 : f32 to vector<8x32xf32>
    %326 = arith.addf %324, %325 : vector<8x32xf32>
    %327 = vector.extract_strided_slice %310 {offsets = [0, 64], sizes = [8, 32], strides = [1, 1]} : vector<8x128xf32> to vector<8x32xf32>
    %328 = math.tanh %327 : vector<8x32xf32>
    %329 = vector.extract_strided_slice %310 {offsets = [0, 96], sizes = [8, 32], strides = [1, 1]} : vector<8x128xf32> to vector<8x32xf32>
    %cst_116 = arith.constant 5.000000e-01 : f32
    %330 = vector.broadcast %cst_116 : f32 to vector<8x32xf32>
    %331 = arith.mulf %330, %329 : vector<8x32xf32>
    %332 = math.tanh %331 : vector<8x32xf32>
    %cst_117 = arith.constant 5.000000e-01 : f32
    %333 = vector.broadcast %cst_117 : f32 to vector<8x32xf32>
    %334 = arith.mulf %333, %332 : vector<8x32xf32>
    %cst_118 = arith.constant 5.000000e-01 : f32
    %335 = vector.broadcast %cst_118 : f32 to vector<8x32xf32>
    %336 = arith.addf %334, %335 : vector<8x32xf32>
    %337 = arith.mulf %326, %306 : vector<8x32xf32>
    %338 = arith.mulf %318, %328 : vector<8x32xf32>
    %339 = arith.addf %337, %338 : vector<8x32xf32>
    %340 = math.tanh %339 : vector<8x32xf32>
    %341 = arith.mulf %336, %340 : vector<8x32xf32>
    %342 = arith.truncf %341 : vector<8x32xf32> to vector<8x32xbf16>
    %343 = vector.extract_strided_slice %304 {offsets = [8, 0], sizes = [8, 128], strides = [1, 1]} : vector<64x128xf32> to vector<8x128xf32>
    %cst_119 = arith.constant dense<0.000000e+00> : vector<8x128xf32>
    %344 = tpu.matmul %342, %300, %cst_119 {dimension_numbers = #tpu.dot_dimension_numbers<[1], [0], [0], [1], [0, 0, 1, 1], [], []>} : vector<8x32xbf16>, vector<32x128xbf16>, vector<8x128xf32> -> vector<8x128xf32>
    %345 = arith.addf %343, %344 : vector<8x128xf32>
    %346 = vector.extract_strided_slice %345 {offsets = [0, 0], sizes = [8, 32], strides = [1, 1]} : vector<8x128xf32> to vector<8x32xf32>
    %cst_120 = arith.constant 5.000000e-01 : f32
    %347 = vector.broadcast %cst_120 : f32 to vector<8x32xf32>
    %348 = arith.mulf %347, %346 : vector<8x32xf32>
    %349 = math.tanh %348 : vector<8x32xf32>
    %cst_121 = arith.constant 5.000000e-01 : f32
    %350 = vector.broadcast %cst_121 : f32 to vector<8x32xf32>
    %351 = arith.mulf %350, %349 : vector<8x32xf32>
    %cst_122 = arith.constant 5.000000e-01 : f32
    %352 = vector.broadcast %cst_122 : f32 to vector<8x32xf32>
    %353 = arith.addf %351, %352 : vector<8x32xf32>
    %354 = vector.extract_strided_slice %345 {offsets = [0, 32], sizes = [8, 32], strides = [1, 1]} : vector<8x128xf32> to vector<8x32xf32>
    %cst_123 = arith.constant 5.000000e-01 : f32
    %355 = vector.broadcast %cst_123 : f32 to vector<8x32xf32>
    %356 = arith.mulf %355, %354 : vector<8x32xf32>
    %357 = math.tanh %356 : vector<8x32xf32>
    %cst_124 = arith.constant 5.000000e-01 : f32
    %358 = vector.broadcast %cst_124 : f32 to vector<8x32xf32>
    %359 = arith.mulf %358, %357 : vector<8x32xf32>
    %cst_125 = arith.constant 5.000000e-01 : f32
    %360 = vector.broadcast %cst_125 : f32 to vector<8x32xf32>
    %361 = arith.addf %359, %360 : vector<8x32xf32>
    %362 = vector.extract_strided_slice %345 {offsets = [0, 64], sizes = [8, 32], strides = [1, 1]} : vector<8x128xf32> to vector<8x32xf32>
    %363 = math.tanh %362 : vector<8x32xf32>
    %364 = vector.extract_strided_slice %345 {offsets = [0, 96], sizes = [8, 32], strides = [1, 1]} : vector<8x128xf32> to vector<8x32xf32>
    %cst_126 = arith.constant 5.000000e-01 : f32
    %365 = vector.broadcast %cst_126 : f32 to vector<8x32xf32>
    %366 = arith.mulf %365, %364 : vector<8x32xf32>
    %367 = math.tanh %366 : vector<8x32xf32>
    %cst_127 = arith.constant 5.000000e-01 : f32
    %368 = vector.broadcast %cst_127 : f32 to vector<8x32xf32>
    %369 = arith.mulf %368, %367 : vector<8x32xf32>
    %cst_128 = arith.constant 5.000000e-01 : f32
    %370 = vector.broadcast %cst_128 : f32 to vector<8x32xf32>
    %371 = arith.addf %369, %370 : vector<8x32xf32>
    %372 = arith.mulf %361, %339 : vector<8x32xf32>
    %373 = arith.mulf %353, %363 : vector<8x32xf32>
    %374 = arith.addf %372, %373 : vector<8x32xf32>
    %375 = math.tanh %374 : vector<8x32xf32>
    %376 = arith.mulf %371, %375 : vector<8x32xf32>
    %377 = arith.truncf %376 : vector<8x32xf32> to vector<8x32xbf16>
    %378 = vector.extract_strided_slice %304 {offsets = [16, 0], sizes = [8, 128], strides = [1, 1]} : vector<64x128xf32> to vector<8x128xf32>
    %cst_129 = arith.constant dense<0.000000e+00> : vector<8x128xf32>
    %379 = tpu.matmul %377, %300, %cst_129 {dimension_numbers = #tpu.dot_dimension_numbers<[1], [0], [0], [1], [0, 0, 1, 1], [], []>} : vector<8x32xbf16>, vector<32x128xbf16>, vector<8x128xf32> -> vector<8x128xf32>
    %380 = arith.addf %378, %379 : vector<8x128xf32>
    %381 = vector.extract_strided_slice %380 {offsets = [0, 0], sizes = [8, 32], strides = [1, 1]} : vector<8x128xf32> to vector<8x32xf32>
    %cst_130 = arith.constant 5.000000e-01 : f32
    %382 = vector.broadcast %cst_130 : f32 to vector<8x32xf32>
    %383 = arith.mulf %382, %381 : vector<8x32xf32>
    %384 = math.tanh %383 : vector<8x32xf32>
    %cst_131 = arith.constant 5.000000e-01 : f32
    %385 = vector.broadcast %cst_131 : f32 to vector<8x32xf32>
    %386 = arith.mulf %385, %384 : vector<8x32xf32>
    %cst_132 = arith.constant 5.000000e-01 : f32
    %387 = vector.broadcast %cst_132 : f32 to vector<8x32xf32>
    %388 = arith.addf %386, %387 : vector<8x32xf32>
    %389 = vector.extract_strided_slice %380 {offsets = [0, 32], sizes = [8, 32], strides = [1, 1]} : vector<8x128xf32> to vector<8x32xf32>
    %cst_133 = arith.constant 5.000000e-01 : f32
    %390 = vector.broadcast %cst_133 : f32 to vector<8x32xf32>
    %391 = arith.mulf %390, %389 : vector<8x32xf32>
    %392 = math.tanh %391 : vector<8x32xf32>
    %cst_134 = arith.constant 5.000000e-01 : f32
    %393 = vector.broadcast %cst_134 : f32 to vector<8x32xf32>
    %394 = arith.mulf %393, %392 : vector<8x32xf32>
    %cst_135 = arith.constant 5.000000e-01 : f32
    %395 = vector.broadcast %cst_135 : f32 to vector<8x32xf32>
    %396 = arith.addf %394, %395 : vector<8x32xf32>
    %397 = vector.extract_strided_slice %380 {offsets = [0, 64], sizes = [8, 32], strides = [1, 1]} : vector<8x128xf32> to vector<8x32xf32>
    %398 = math.tanh %397 : vector<8x32xf32>
    %399 = vector.extract_strided_slice %380 {offsets = [0, 96], sizes = [8, 32], strides = [1, 1]} : vector<8x128xf32> to vector<8x32xf32>
    %cst_136 = arith.constant 5.000000e-01 : f32
    %400 = vector.broadcast %cst_136 : f32 to vector<8x32xf32>
    %401 = arith.mulf %400, %399 : vector<8x32xf32>
    %402 = math.tanh %401 : vector<8x32xf32>
    %cst_137 = arith.constant 5.000000e-01 : f32
    %403 = vector.broadcast %cst_137 : f32 to vector<8x32xf32>
    %404 = arith.mulf %403, %402 : vector<8x32xf32>
    %cst_138 = arith.constant 5.000000e-01 : f32
    %405 = vector.broadcast %cst_138 : f32 to vector<8x32xf32>
    %406 = arith.addf %404, %405 : vector<8x32xf32>
    %407 = arith.mulf %396, %374 : vector<8x32xf32>
    %408 = arith.mulf %388, %398 : vector<8x32xf32>
    %409 = arith.addf %407, %408 : vector<8x32xf32>
    %410 = math.tanh %409 : vector<8x32xf32>
    %411 = arith.mulf %406, %410 : vector<8x32xf32>
    %412 = arith.truncf %411 : vector<8x32xf32> to vector<8x32xbf16>
    %413 = vector.extract_strided_slice %304 {offsets = [24, 0], sizes = [8, 128], strides = [1, 1]} : vector<64x128xf32> to vector<8x128xf32>
    %cst_139 = arith.constant dense<0.000000e+00> : vector<8x128xf32>
    %414 = tpu.matmul %412, %300, %cst_139 {dimension_numbers = #tpu.dot_dimension_numbers<[1], [0], [0], [1], [0, 0, 1, 1], [], []>} : vector<8x32xbf16>, vector<32x128xbf16>, vector<8x128xf32> -> vector<8x128xf32>
    %415 = arith.addf %413, %414 : vector<8x128xf32>
    %416 = vector.extract_strided_slice %415 {offsets = [0, 0], sizes = [8, 32], strides = [1, 1]} : vector<8x128xf32> to vector<8x32xf32>
    %cst_140 = arith.constant 5.000000e-01 : f32
    %417 = vector.broadcast %cst_140 : f32 to vector<8x32xf32>
    %418 = arith.mulf %417, %416 : vector<8x32xf32>
    %419 = math.tanh %418 : vector<8x32xf32>
    %cst_141 = arith.constant 5.000000e-01 : f32
    %420 = vector.broadcast %cst_141 : f32 to vector<8x32xf32>
    %421 = arith.mulf %420, %419 : vector<8x32xf32>
    %cst_142 = arith.constant 5.000000e-01 : f32
    %422 = vector.broadcast %cst_142 : f32 to vector<8x32xf32>
    %423 = arith.addf %421, %422 : vector<8x32xf32>
    %424 = vector.extract_strided_slice %415 {offsets = [0, 32], sizes = [8, 32], strides = [1, 1]} : vector<8x128xf32> to vector<8x32xf32>
    %cst_143 = arith.constant 5.000000e-01 : f32
    %425 = vector.broadcast %cst_143 : f32 to vector<8x32xf32>
    %426 = arith.mulf %425, %424 : vector<8x32xf32>
    %427 = math.tanh %426 : vector<8x32xf32>
    %cst_144 = arith.constant 5.000000e-01 : f32
    %428 = vector.broadcast %cst_144 : f32 to vector<8x32xf32>
    %429 = arith.mulf %428, %427 : vector<8x32xf32>
    %cst_145 = arith.constant 5.000000e-01 : f32
    %430 = vector.broadcast %cst_145 : f32 to vector<8x32xf32>
    %431 = arith.addf %429, %430 : vector<8x32xf32>
    %432 = vector.extract_strided_slice %415 {offsets = [0, 64], sizes = [8, 32], strides = [1, 1]} : vector<8x128xf32> to vector<8x32xf32>
    %433 = math.tanh %432 : vector<8x32xf32>
    %434 = vector.extract_strided_slice %415 {offsets = [0, 96], sizes = [8, 32], strides = [1, 1]} : vector<8x128xf32> to vector<8x32xf32>
    %cst_146 = arith.constant 5.000000e-01 : f32
    %435 = vector.broadcast %cst_146 : f32 to vector<8x32xf32>
    %436 = arith.mulf %435, %434 : vector<8x32xf32>
    %437 = math.tanh %436 : vector<8x32xf32>
    %cst_147 = arith.constant 5.000000e-01 : f32
    %438 = vector.broadcast %cst_147 : f32 to vector<8x32xf32>
    %439 = arith.mulf %438, %437 : vector<8x32xf32>
    %cst_148 = arith.constant 5.000000e-01 : f32
    %440 = vector.broadcast %cst_148 : f32 to vector<8x32xf32>
    %441 = arith.addf %439, %440 : vector<8x32xf32>
    %442 = arith.mulf %431, %409 : vector<8x32xf32>
    %443 = arith.mulf %423, %433 : vector<8x32xf32>
    %444 = arith.addf %442, %443 : vector<8x32xf32>
    %445 = math.tanh %444 : vector<8x32xf32>
    %446 = arith.mulf %441, %445 : vector<8x32xf32>
    %447 = arith.truncf %446 : vector<8x32xf32> to vector<8x32xbf16>
    %448 = vector.extract_strided_slice %304 {offsets = [32, 0], sizes = [8, 128], strides = [1, 1]} : vector<64x128xf32> to vector<8x128xf32>
    %cst_149 = arith.constant dense<0.000000e+00> : vector<8x128xf32>
    %449 = tpu.matmul %447, %300, %cst_149 {dimension_numbers = #tpu.dot_dimension_numbers<[1], [0], [0], [1], [0, 0, 1, 1], [], []>} : vector<8x32xbf16>, vector<32x128xbf16>, vector<8x128xf32> -> vector<8x128xf32>
    %450 = arith.addf %448, %449 : vector<8x128xf32>
    %451 = vector.extract_strided_slice %450 {offsets = [0, 0], sizes = [8, 32], strides = [1, 1]} : vector<8x128xf32> to vector<8x32xf32>
    %cst_150 = arith.constant 5.000000e-01 : f32
    %452 = vector.broadcast %cst_150 : f32 to vector<8x32xf32>
    %453 = arith.mulf %452, %451 : vector<8x32xf32>
    %454 = math.tanh %453 : vector<8x32xf32>
    %cst_151 = arith.constant 5.000000e-01 : f32
    %455 = vector.broadcast %cst_151 : f32 to vector<8x32xf32>
    %456 = arith.mulf %455, %454 : vector<8x32xf32>
    %cst_152 = arith.constant 5.000000e-01 : f32
    %457 = vector.broadcast %cst_152 : f32 to vector<8x32xf32>
    %458 = arith.addf %456, %457 : vector<8x32xf32>
    %459 = vector.extract_strided_slice %450 {offsets = [0, 32], sizes = [8, 32], strides = [1, 1]} : vector<8x128xf32> to vector<8x32xf32>
    %cst_153 = arith.constant 5.000000e-01 : f32
    %460 = vector.broadcast %cst_153 : f32 to vector<8x32xf32>
    %461 = arith.mulf %460, %459 : vector<8x32xf32>
    %462 = math.tanh %461 : vector<8x32xf32>
    %cst_154 = arith.constant 5.000000e-01 : f32
    %463 = vector.broadcast %cst_154 : f32 to vector<8x32xf32>
    %464 = arith.mulf %463, %462 : vector<8x32xf32>
    %cst_155 = arith.constant 5.000000e-01 : f32
    %465 = vector.broadcast %cst_155 : f32 to vector<8x32xf32>
    %466 = arith.addf %464, %465 : vector<8x32xf32>
    %467 = vector.extract_strided_slice %450 {offsets = [0, 64], sizes = [8, 32], strides = [1, 1]} : vector<8x128xf32> to vector<8x32xf32>
    %468 = math.tanh %467 : vector<8x32xf32>
    %469 = vector.extract_strided_slice %450 {offsets = [0, 96], sizes = [8, 32], strides = [1, 1]} : vector<8x128xf32> to vector<8x32xf32>
    %cst_156 = arith.constant 5.000000e-01 : f32
    %470 = vector.broadcast %cst_156 : f32 to vector<8x32xf32>
    %471 = arith.mulf %470, %469 : vector<8x32xf32>
    %472 = math.tanh %471 : vector<8x32xf32>
    %cst_157 = arith.constant 5.000000e-01 : f32
    %473 = vector.broadcast %cst_157 : f32 to vector<8x32xf32>
    %474 = arith.mulf %473, %472 : vector<8x32xf32>
    %cst_158 = arith.constant 5.000000e-01 : f32
    %475 = vector.broadcast %cst_158 : f32 to vector<8x32xf32>
    %476 = arith.addf %474, %475 : vector<8x32xf32>
    %477 = arith.mulf %466, %444 : vector<8x32xf32>
    %478 = arith.mulf %458, %468 : vector<8x32xf32>
    %479 = arith.addf %477, %478 : vector<8x32xf32>
    %480 = math.tanh %479 : vector<8x32xf32>
    %481 = arith.mulf %476, %480 : vector<8x32xf32>
    %482 = arith.truncf %481 : vector<8x32xf32> to vector<8x32xbf16>
    %483 = vector.extract_strided_slice %304 {offsets = [40, 0], sizes = [8, 128], strides = [1, 1]} : vector<64x128xf32> to vector<8x128xf32>
    %cst_159 = arith.constant dense<0.000000e+00> : vector<8x128xf32>
    %484 = tpu.matmul %482, %300, %cst_159 {dimension_numbers = #tpu.dot_dimension_numbers<[1], [0], [0], [1], [0, 0, 1, 1], [], []>} : vector<8x32xbf16>, vector<32x128xbf16>, vector<8x128xf32> -> vector<8x128xf32>
    %485 = arith.addf %483, %484 : vector<8x128xf32>
    %486 = vector.extract_strided_slice %485 {offsets = [0, 0], sizes = [8, 32], strides = [1, 1]} : vector<8x128xf32> to vector<8x32xf32>
    %cst_160 = arith.constant 5.000000e-01 : f32
    %487 = vector.broadcast %cst_160 : f32 to vector<8x32xf32>
    %488 = arith.mulf %487, %486 : vector<8x32xf32>
    %489 = math.tanh %488 : vector<8x32xf32>
    %cst_161 = arith.constant 5.000000e-01 : f32
    %490 = vector.broadcast %cst_161 : f32 to vector<8x32xf32>
    %491 = arith.mulf %490, %489 : vector<8x32xf32>
    %cst_162 = arith.constant 5.000000e-01 : f32
    %492 = vector.broadcast %cst_162 : f32 to vector<8x32xf32>
    %493 = arith.addf %491, %492 : vector<8x32xf32>
    %494 = vector.extract_strided_slice %485 {offsets = [0, 32], sizes = [8, 32], strides = [1, 1]} : vector<8x128xf32> to vector<8x32xf32>
    %cst_163 = arith.constant 5.000000e-01 : f32
    %495 = vector.broadcast %cst_163 : f32 to vector<8x32xf32>
    %496 = arith.mulf %495, %494 : vector<8x32xf32>
    %497 = math.tanh %496 : vector<8x32xf32>
    %cst_164 = arith.constant 5.000000e-01 : f32
    %498 = vector.broadcast %cst_164 : f32 to vector<8x32xf32>
    %499 = arith.mulf %498, %497 : vector<8x32xf32>
    %cst_165 = arith.constant 5.000000e-01 : f32
    %500 = vector.broadcast %cst_165 : f32 to vector<8x32xf32>
    %501 = arith.addf %499, %500 : vector<8x32xf32>
    %502 = vector.extract_strided_slice %485 {offsets = [0, 64], sizes = [8, 32], strides = [1, 1]} : vector<8x128xf32> to vector<8x32xf32>
    %503 = math.tanh %502 : vector<8x32xf32>
    %504 = vector.extract_strided_slice %485 {offsets = [0, 96], sizes = [8, 32], strides = [1, 1]} : vector<8x128xf32> to vector<8x32xf32>
    %cst_166 = arith.constant 5.000000e-01 : f32
    %505 = vector.broadcast %cst_166 : f32 to vector<8x32xf32>
    %506 = arith.mulf %505, %504 : vector<8x32xf32>
    %507 = math.tanh %506 : vector<8x32xf32>
    %cst_167 = arith.constant 5.000000e-01 : f32
    %508 = vector.broadcast %cst_167 : f32 to vector<8x32xf32>
    %509 = arith.mulf %508, %507 : vector<8x32xf32>
    %cst_168 = arith.constant 5.000000e-01 : f32
    %510 = vector.broadcast %cst_168 : f32 to vector<8x32xf32>
    %511 = arith.addf %509, %510 : vector<8x32xf32>
    %512 = arith.mulf %501, %479 : vector<8x32xf32>
    %513 = arith.mulf %493, %503 : vector<8x32xf32>
    %514 = arith.addf %512, %513 : vector<8x32xf32>
    %515 = math.tanh %514 : vector<8x32xf32>
    %516 = arith.mulf %511, %515 : vector<8x32xf32>
    %517 = arith.truncf %516 : vector<8x32xf32> to vector<8x32xbf16>
    %518 = vector.extract_strided_slice %304 {offsets = [48, 0], sizes = [8, 128], strides = [1, 1]} : vector<64x128xf32> to vector<8x128xf32>
    %cst_169 = arith.constant dense<0.000000e+00> : vector<8x128xf32>
    %519 = tpu.matmul %517, %300, %cst_169 {dimension_numbers = #tpu.dot_dimension_numbers<[1], [0], [0], [1], [0, 0, 1, 1], [], []>} : vector<8x32xbf16>, vector<32x128xbf16>, vector<8x128xf32> -> vector<8x128xf32>
    %520 = arith.addf %518, %519 : vector<8x128xf32>
    %521 = vector.extract_strided_slice %520 {offsets = [0, 0], sizes = [8, 32], strides = [1, 1]} : vector<8x128xf32> to vector<8x32xf32>
    %cst_170 = arith.constant 5.000000e-01 : f32
    %522 = vector.broadcast %cst_170 : f32 to vector<8x32xf32>
    %523 = arith.mulf %522, %521 : vector<8x32xf32>
    %524 = math.tanh %523 : vector<8x32xf32>
    %cst_171 = arith.constant 5.000000e-01 : f32
    %525 = vector.broadcast %cst_171 : f32 to vector<8x32xf32>
    %526 = arith.mulf %525, %524 : vector<8x32xf32>
    %cst_172 = arith.constant 5.000000e-01 : f32
    %527 = vector.broadcast %cst_172 : f32 to vector<8x32xf32>
    %528 = arith.addf %526, %527 : vector<8x32xf32>
    %529 = vector.extract_strided_slice %520 {offsets = [0, 32], sizes = [8, 32], strides = [1, 1]} : vector<8x128xf32> to vector<8x32xf32>
    %cst_173 = arith.constant 5.000000e-01 : f32
    %530 = vector.broadcast %cst_173 : f32 to vector<8x32xf32>
    %531 = arith.mulf %530, %529 : vector<8x32xf32>
    %532 = math.tanh %531 : vector<8x32xf32>
    %cst_174 = arith.constant 5.000000e-01 : f32
    %533 = vector.broadcast %cst_174 : f32 to vector<8x32xf32>
    %534 = arith.mulf %533, %532 : vector<8x32xf32>
    %cst_175 = arith.constant 5.000000e-01 : f32
    %535 = vector.broadcast %cst_175 : f32 to vector<8x32xf32>
    %536 = arith.addf %534, %535 : vector<8x32xf32>
    %537 = vector.extract_strided_slice %520 {offsets = [0, 64], sizes = [8, 32], strides = [1, 1]} : vector<8x128xf32> to vector<8x32xf32>
    %538 = math.tanh %537 : vector<8x32xf32>
    %539 = vector.extract_strided_slice %520 {offsets = [0, 96], sizes = [8, 32], strides = [1, 1]} : vector<8x128xf32> to vector<8x32xf32>
    %cst_176 = arith.constant 5.000000e-01 : f32
    %540 = vector.broadcast %cst_176 : f32 to vector<8x32xf32>
    %541 = arith.mulf %540, %539 : vector<8x32xf32>
    %542 = math.tanh %541 : vector<8x32xf32>
    %cst_177 = arith.constant 5.000000e-01 : f32
    %543 = vector.broadcast %cst_177 : f32 to vector<8x32xf32>
    %544 = arith.mulf %543, %542 : vector<8x32xf32>
    %cst_178 = arith.constant 5.000000e-01 : f32
    %545 = vector.broadcast %cst_178 : f32 to vector<8x32xf32>
    %546 = arith.addf %544, %545 : vector<8x32xf32>
    %547 = arith.mulf %536, %514 : vector<8x32xf32>
    %548 = arith.mulf %528, %538 : vector<8x32xf32>
    %549 = arith.addf %547, %548 : vector<8x32xf32>
    %550 = math.tanh %549 : vector<8x32xf32>
    %551 = arith.mulf %546, %550 : vector<8x32xf32>
    %552 = arith.truncf %551 : vector<8x32xf32> to vector<8x32xbf16>
    %553 = vector.extract_strided_slice %304 {offsets = [56, 0], sizes = [8, 128], strides = [1, 1]} : vector<64x128xf32> to vector<8x128xf32>
    %cst_179 = arith.constant dense<0.000000e+00> : vector<8x128xf32>
    %554 = tpu.matmul %552, %300, %cst_179 {dimension_numbers = #tpu.dot_dimension_numbers<[1], [0], [0], [1], [0, 0, 1, 1], [], []>} : vector<8x32xbf16>, vector<32x128xbf16>, vector<8x128xf32> -> vector<8x128xf32>
    %555 = arith.addf %553, %554 : vector<8x128xf32>
    %556 = vector.extract_strided_slice %555 {offsets = [0, 0], sizes = [8, 32], strides = [1, 1]} : vector<8x128xf32> to vector<8x32xf32>
    %cst_180 = arith.constant 5.000000e-01 : f32
    %557 = vector.broadcast %cst_180 : f32 to vector<8x32xf32>
    %558 = arith.mulf %557, %556 : vector<8x32xf32>
    %559 = math.tanh %558 : vector<8x32xf32>
    %cst_181 = arith.constant 5.000000e-01 : f32
    %560 = vector.broadcast %cst_181 : f32 to vector<8x32xf32>
    %561 = arith.mulf %560, %559 : vector<8x32xf32>
    %cst_182 = arith.constant 5.000000e-01 : f32
    %562 = vector.broadcast %cst_182 : f32 to vector<8x32xf32>
    %563 = arith.addf %561, %562 : vector<8x32xf32>
    %564 = vector.extract_strided_slice %555 {offsets = [0, 32], sizes = [8, 32], strides = [1, 1]} : vector<8x128xf32> to vector<8x32xf32>
    %cst_183 = arith.constant 5.000000e-01 : f32
    %565 = vector.broadcast %cst_183 : f32 to vector<8x32xf32>
    %566 = arith.mulf %565, %564 : vector<8x32xf32>
    %567 = math.tanh %566 : vector<8x32xf32>
    %cst_184 = arith.constant 5.000000e-01 : f32
    %568 = vector.broadcast %cst_184 : f32 to vector<8x32xf32>
    %569 = arith.mulf %568, %567 : vector<8x32xf32>
    %cst_185 = arith.constant 5.000000e-01 : f32
    %570 = vector.broadcast %cst_185 : f32 to vector<8x32xf32>
    %571 = arith.addf %569, %570 : vector<8x32xf32>
    %572 = vector.extract_strided_slice %555 {offsets = [0, 64], sizes = [8, 32], strides = [1, 1]} : vector<8x128xf32> to vector<8x32xf32>
    %573 = math.tanh %572 : vector<8x32xf32>
    %574 = vector.extract_strided_slice %555 {offsets = [0, 96], sizes = [8, 32], strides = [1, 1]} : vector<8x128xf32> to vector<8x32xf32>
    %cst_186 = arith.constant 5.000000e-01 : f32
    %575 = vector.broadcast %cst_186 : f32 to vector<8x32xf32>
    %576 = arith.mulf %575, %574 : vector<8x32xf32>
    %577 = math.tanh %576 : vector<8x32xf32>
    %cst_187 = arith.constant 5.000000e-01 : f32
    %578 = vector.broadcast %cst_187 : f32 to vector<8x32xf32>
    %579 = arith.mulf %578, %577 : vector<8x32xf32>
    %cst_188 = arith.constant 5.000000e-01 : f32
    %580 = vector.broadcast %cst_188 : f32 to vector<8x32xf32>
    %581 = arith.addf %579, %580 : vector<8x32xf32>
    %582 = arith.mulf %571, %549 : vector<8x32xf32>
    %583 = arith.mulf %563, %573 : vector<8x32xf32>
    %584 = arith.addf %582, %583 : vector<8x32xf32>
    %585 = math.tanh %584 : vector<8x32xf32>
    %586 = arith.mulf %581, %585 : vector<8x32xf32>
    %587 = arith.truncf %586 : vector<8x32xf32> to vector<8x32xbf16>
    %c0_189 = arith.constant 0 : index
    %c0_190 = arith.constant 0 : index
    %588 = vector.load %arg7[%c0_189, %c0_190] : memref<32x128xbf16, #tpu.memory_space<vmem>>, vector<32x128xbf16>
    %cst_191 = arith.constant dense<0.000000e+00> : vector<8x128xf32>
    %589 = tpu.matmul %587, %588, %cst_191 {dimension_numbers = #tpu.dot_dimension_numbers<[1], [0], [0], [1], [0, 0, 1, 1], [], []>} : vector<8x32xbf16>, vector<32x128xbf16>, vector<8x128xf32> -> vector<8x128xf32>
    %c0_192 = arith.constant 0 : index
    %c0_193 = arith.constant 0 : index
    %590 = vector.load %arg8[%c0_192, %c0_193] : memref<1x128xf32, #tpu.memory_space<vmem>>, vector<1x128xf32>
    %591 = vector.broadcast %590 : vector<1x128xf32> to vector<8x128xf32>
    %592 = arith.addf %589, %591 : vector<8x128xf32>
    %c0_194 = arith.constant 0 : index
    %c0_195 = arith.constant 0 : index
    %593 = vector.load %arg9[%c0_194, %c0_195] : memref<8x128xf32, #tpu.memory_space<vmem>>, vector<8x128xf32>
    tpu.vector_store %arg9[%c0_194, %c0_195], %592 {strides = array<i32>} : memref<8x128xf32, #tpu.memory_space<vmem>>, vector<8x128xf32>,
    return
  }
}

</mosaic_0001>

<bundles_post_ra>
// kernel: tpu_custom_call.1
= control target key start
LH: loop header
LB: loop body
LE: loop exit
PB: predicated region body
PF: predicated region fallthrough
CT: control target
= control target key end

     0   :  { %14 = vsyncpa [#allocation4], 0  ;;  %s2417_s0 = inlined_call_operand.vmem [shape: bf16[64,8], index: 0, kind: input, shape index: {}]   ;;  %s2418_s1 = inlined_call_operand.hbm [shape: bf16[8,128], index: 1, kind: input, shape index: {}]   ;;  %s2419_s2 = inlined_call_operand.vmem [shape: bf16[32,128], index: 2, kind: input, shape index: {}]   ;;  %s2420_s3 = inlined_call_operand.vmem [shape: f32[1,128], index: 3, kind: input, shape index: {}]   ;;  %s2421_s4 = inlined_call_operand.vmem [shape: bf16[32,128], index: 4, kind: input, shape index: {}]   ;;  %s2422_s5 = inlined_call_operand.vmem [shape: bf16[32,128], index: 5, kind: input, shape index: {}]   ;;  %s2423_s6 = inlined_call_operand.vmem [shape: f32[1,128], index: 6, kind: input, shape index: {}]   ;;  %s2424_s7 = inlined_call_operand.hbm [shape: bf16[32,128], index: 7, kind: input, shape index: {}]   ;;  %s2425_s8 = inlined_call_operand.vmem [shape: f32[1,128], index: 8, kind: input, shape index: {}]   ;;  %s2426_s9 = inlined_call_operand.hbm [shape: f32[8,128], index: 9, kind: output, shape index: {}]  }
   0x1   :  { %15 = vsyncpa [#allocation7], 0 }
   0x2   :  { %16 = vsyncpa [#allocation5], 0  ;;  %s1991_s30 = smov [#allocation3]   ;;  %s1992_s11 = smov [#allocation6]  }
   0x3   :  { %s25_s10 = sshll.u32 %s1991_s30, 4  ;;  %s44_s12 = sshll.u32 %s1992_s11, 4  ;;  %s26_s10 = int_to_ptr.vmem [resolvable:$true] %s25_s10  ;;  %s2050_s12 = int_to_ptr.vmem [resolvable:$true] %s44_s12 }
   0x4   :  { %s1919_s15 = scalar_lea.hbm %s2418_s1, 64 }
   0x5   :  { %p1920_p0 = scmp.ne.s32.totalorder %s2418_s1, %s1919_s15  ;;  %p1923_p1 = scmp.lt.u32.totalorder %s1919_s15, %s2418_s1 }
   0x7   :  { %p1925_p2 = pnand %p1923_p1, %p1920_p0 }
   0x9   :  { %1928 = shalt.err (!%p1925_p2)
}
   0xa   :  { %s1929_s20 = scalar_lea.vmem %s26_s10, 64  ;;  %p1934_p4 = scmp.lt.s32.totalorder %s26_s10, %s26_s10 }
   0xb   :  { %p1930_p3 = scmp.ne.s32.totalorder %s26_s10, %s1929_s20  ;;  %p1935_p5 = scmp.lt.s32.totalorder %s1929_s20, %s1929_s20 }
   0xd   :  { %p1936_p6 = por %p1935_p5, %p1934_p4 }
   0xf   :  { %p1937_p7 = pnand %p1936_p6, %p1930_p3 }
  0x11   :  { %1940 = shalt.err (!%p1937_p7)
}
  0x12   :  { %28 = dma.hbm_to_vmem [thread:$0]  %s2418_s1, 64, %s26_s10, [#allocation4]  }
  0x13   :  { %s1941_s25 = scalar_lea.hbm %s2424_s7, 256 }
  0x14   :  { %p1942_p8 = scmp.ne.s32.totalorder %s2424_s7, %s1941_s25  ;;  %p1945_p9 = scmp.lt.u32.totalorder %s1941_s25, %s2424_s7 }
  0x16   :  { %p1947_p10 = pnand %p1945_p9, %p1942_p8 }
  0x18   :  { %1950 = shalt.err (!%p1947_p10)
}
  0x19   :  { %s1951_s30 = scalar_lea.vmem %s2050_s12, 256  ;;  %p1956_p12 = scmp.lt.s32.totalorder %s2050_s12, %s2050_s12 }
  0x1a   :  { %p1952_p11 = scmp.ne.s32.totalorder %s2050_s12, %s1951_s30  ;;  %p1957_p13 = scmp.lt.s32.totalorder %s1951_s30, %s1951_s30 }
  0x1c   :  { %p1958_p0 = por %p1957_p13, %p1956_p12 }
  0x1e   :  { %p1959_p1 = pnand %p1958_p0, %p1952_p11 }
  0x20   :  { %1962 = shalt.err (!%p1959_p1)
}
  0x21   :  { %s1993_s1 = smov 64   ;;  %s1994_s10 = smov 4  }
  0x22   :  { %50 = dma.hbm_to_vmem [thread:$0]  %s2424_s7, 256, %s2050_s12, [#allocation7], %s1993_s1, %s1993_s1, %s1994_s10  }
  0x23   :  { %1985 = dma.done.wait [#allocation4], 64  }
  0x24   :  { %1986 = vsyncadd [#allocation4], 4294967232 }
  0x25   :  { %1987 = dma.done.wait [#allocation7], 256  }
  0x26   :  { %1988 = vsyncadd [#allocation7], 4294967040  ;;  %v1995_v0 = vmov 0.0   ;;  %vm1996_vm0 = vmmov 0   ;;  %vm113_vm1 = vcmask 1043456   ;;  %vm100_vm2 = vcmask 64512  }
  0x27   :  { %1653 = vmatprep.subr.bf16.mxu1 %v1995_v0  ;;  %1657 = vmatprep.mubr.msk.bf16.mxu1 %vm1996_vm0, %v1995_v0  ;;  %v68_v1 = vld [vmem:[#allocation3] sm:$0xf]  ;;  %v2089_v3 = vld [vmem:[%s2419_s2] sm:$0xff]   ;;  %v1813_v5 = vld [vmem:[%s2417_s0 + $0x8] sm:$0xff]   ;;  %v1997_v7 = vmov 0   ;;  %vm266_vm3 = vcmask 257024  }
  0x28   :  { %1801 = vmatprep.subr.msk.bf16.mxu0 %vm113_vm1, %v68_v1  ;;  %v115_v2 = vsel %vm113_vm1, %v68_v1, 0  ;;  %v1812_v4 = vld [vmem:[%s2417_s0] sm:$0xff]   ;;  %1654 = vmatpush3.bf16.msra.mxu1 %v2089_v3  ;;  %v2104_v6 = vld [vmem:[%s2419_s2 + $0x8] sm:$0xff]   ;;  %vm194_vm4 = vcmask 261120   ;;  %v1815_v50 = vld [vmem:[%s2417_s0 + $0x10] sm:$0xff]   ;;  %vm340_vm5 = vcmask 261124  }
  0x29   :  { %1644 = vmatpush3.bf16.msra.mxu0 %v115_v2  ;;  %1645 = vmatprep.mubr.msk.bf16.mxu0 %vm100_vm2, %v1812_v4  ;;  %v2123_v8 = vld [vmem:[%s2420_s3] ss:$0 sm:$0xff]  ;;  %s1998_s3 = smov 32   ;;  %v1816_v51 = vld [vmem:[%s2417_s0 + $0x18] sm:$0xff]   ;;  %s1999_s13 = smov [#allocation8]  }
  0x2a   :  { %1669 = vmatprep.subr.bf16.mxu0 %v1995_v0  ;;  %1655 = vmatprep.subr.bf16.mxu1 %v1995_v0  ;;  %s1533_s14 = sshll.u32 %s1999_s13, 4  ;;  %s1534_s14 = int_to_ptr.vmem [resolvable:$true] %s1533_s14 }
  0x2b   :  { %p1968_p3 = scmp.lt.s32.totalorder %s1534_s14, %s1534_s14 }
  0x2c   :  { %1646 = vmatmul.mubr.msk.bf16.vlgmr.msra.gmra.mrb[0].mxu0 %vm100_vm2, %v1813_v5  ;;  %1656 = vmatpush3.bf16.msra.mxu1 %v2104_v6 }
  0x2d   :  { %1670 = vmatpush3.bf16.msra.mxu0 %v2089_v3  ;;  %1661 = vmatprep.subr.bf16.mxu1 %v1995_v0 }
  0x2e   :  { %1671 = vmatprep.subr.bf16.mxu0 %v1995_v0  ;;  %1649 = vmatprep.mubr.msk.bf16.mxu0 %vm100_vm2, %v1815_v50 }
  0x2f   :  { %1658 = vmatmul.mubr.bf16.vlgmr.msra.gmra.mrb[0].mxu1 %v1997_v7 }
  0x30   :  { %1662 = vmatpush3.bf16.msra.mxu1 %v2089_v3  ;;  %1665 = vmatprep.mubr.msk.bf16.mxu1 %vm1996_vm0, %v1995_v0 }
  0x31   :  { %1672 = vmatpush3.bf16.msra.mxu0 %v2104_v6  ;;  %1663 = vmatprep.subr.bf16.mxu1 %v1995_v0 }
  0x32   :  { %1685 = vmatprep.subr.bf16.mxu0 %v1995_v0 }
  0x34   :  { %1664 = vmatpush3.bf16.msra.mxu1 %v2104_v6  ;;  %1650 = vmatmul.mubr.msk.bf16.gmra.mrb[4].mxu0 %vm100_vm2, %v1816_v51 }
  0x35   :  { %1677 = vmatprep.subr.bf16.mxu1 %v1995_v0  ;;  %1673 = vmatprep.mubr.msk.bf16.mxu0 %vm1996_vm0, %v1995_v0 }
  0xff   :  { %v2125_v9 = vpop.f32.mrb[0].mxu0 }
 0x100   :  { %v151_v10 = vpop.f32.mrb[1].mxu0  ;;  %v160_v61 = vadd.f32 %v2125_v9, %v2123_v8 }
 0x101   :  { %v152_v11 = vadd.f32 %v2123_v8, %v151_v10  ;;  %v2128_v12 = vpop.f32.mrb[2].mxu0 }
 0x102   :  { %v154_v13 = vpop.f32.mrb[3].mxu0  ;;  %v232_v14 = vpop.f32.mrb[0].mxu1 }
 0x103   :  { %v238_v15 = vadd.f32 %v232_v14, %v152_v11  ;;  %v1659_v16 = vpop.f32.mrb[1].mxu1  ;;  %v155_v34 = vadd.f32 %v2123_v8, %v154_v13 }
 0x104   :  { %v235_v17 = vpop.f32.mrb[2].mxu1 }
 0x105   :  { %v1660_v18 = vpop.f32.mrb[3].mxu1  ;;  %1823 = vtanh.f32 %v238_v15  ;;  %v239_v20 = vmul.f32 0.5, %v238_v15 }
 0x107   :  { %1825 = vtanh.f32 %v239_v20  ;;  %v2160_v56 = vpop.f32.mrb[4].mxu0 }
 0x108   :  { %v2162_v57 = vpop.f32.mrb[5].mxu0 }
 0x109   :  { %v2164_v58 = vpop.f32.mrb[6].mxu0 }
 0x10a   :  { %v2166_v59 = vpop.f32.mrb[7].mxu0 }
 0x10f   :  { %v1824_v19 = vpop.eup %1823 }
 0x110   :  { %246 = vrot.lane.b32.xlu0 %v1824_v19, %s1993_s1 }
 0x111   :  { %v1826_v21 = vpop.eup %1825 }
 0x112   :  { %v241_v22 = vmul.f32 0.5, %v1826_v21 }
 0x114   :  { %v242_v23 = vadd.f32 0.5, %v241_v22 }
 0x116   :  { %v244_v26 = vmul.f32 0.0, %v242_v23 }
 0x182   :  { %v247_v24 = vpop.permute.xlu0 %246 }
 0x183   :  { %v249_v25 = vmul.f32 %v247_v24, %v242_v23  ;;  %v163_v24 = vadd.f32 %v2128_v12, %v2123_v8 }
 0x185   :  { %251 = vrot.lane.b32.xlu0 %v249_v25, %s1998_s3 }
 0x1f7   :  { %v252_v27 = vpop.permute.xlu0 %251 }
 0x1f8   :  { %v254_v28 = vadd.f32 %v252_v27, %v244_v26 }
 0x1fa   :  { %1827 = vtanh.f32 %v254_v28 }
 0x204   :  { %v1828_v29 = vpop.eup %1827 }
 0x205   :  { %257 = vrot.lane.b32.xlu1 %v1828_v29, %s1993_s1 }
 0x277   :  { %v258_v30 = vpop.permute.xlu1 %257 }
 0x278   :  { %v260_v31 = vmul.f32 %v258_v30, %v242_v23 }
 0x27a   :  { %v261_v32 = vpack.c.bf16 %v260_v31, %v260_v31 }
 0x27c   :  { %263 = vrot.lane.b32.xlu1 %v261_v32, %s1998_s3 }
 0x2ee   :  { %v264_v33 = vpop.permute.xlu1 %263 }
 0x2ef   :  { %267 = vst.msk [vmem:[#allocation2] sm:$0xf] %vm266_vm3, %v264_v33  ;;  %1666 = vmatmul.mubr.msk.bf16.vlgmr.msra.gmra.mrb[4].mxu1 %vm194_vm4, %v264_v33 }
 0x2f0   :  { %1678 = vmatpush3.bf16.msra.mxu1 %v2089_v3  ;;  %1681 = vmatprep.mubr.msk.bf16.mxu1 %vm1996_vm0, %v1995_v0 }
 0x2f1   :  { %1679 = vmatprep.subr.bf16.mxu1 %v1995_v0 }
 0x2f4   :  { %1680 = vmatpush3.bf16.msra.mxu1 %v2104_v6 }
 0x2f5   :  { %1693 = vmatprep.subr.bf16.mxu1 %v1995_v0 }
 0x3c2   :  { %v305_v35 = vpop.f32.mrb[4].mxu1 }
 0x3c3   :  { %v311_v36 = vadd.f32 %v305_v35, %v155_v34  ;;  %v1667_v37 = vpop.f32.mrb[5].mxu1 }
 0x3c4   :  { %v308_v38 = vpop.f32.mrb[6].mxu1 }
 0x3c5   :  { %1829 = vtanh.f32 %v311_v36  ;;  %v1668_v39 = vpop.f32.mrb[7].mxu1  ;;  %v312_v41 = vmul.f32 0.5, %v311_v36 }
 0x3c7   :  { %1831 = vtanh.f32 %v312_v41 }
 0x3cf   :  { %v1830_v40 = vpop.eup %1829 }
 0x3d0   :  { %319 = vrot.lane.b32.xlu0 %v1830_v40, %s1993_s1 }
 0x3d1   :  { %v1832_v42 = vpop.eup %1831 }
 0x3d2   :  { %v314_v43 = vmul.f32 0.5, %v1832_v42 }
 0x3d4   :  { %v315_v44 = vadd.f32 0.5, %v314_v43 }
 0x3d6   :  { %v317_v47 = vmul.f32 %v315_v44, %v254_v28 }
 0x442   :  { %v320_v45 = vpop.permute.xlu0 %319 }
 0x443   :  { %v322_v46 = vmul.f32 %v320_v45, %v315_v44 }
 0x445   :  { %324 = vrot.lane.b32.xlu1 %v322_v46, %s1998_s3 }
 0x4b7   :  { %v325_v48 = vpop.permute.xlu1 %324 }
 0x4b8   :  { %v327_v49 = vadd.f32 %v325_v48, %v317_v47 }
 0x4ba   :  { %1833 = vtanh.f32 %v327_v49 }
 0x4c4   :  { %v1834_v52 = vpop.eup %1833 }
 0x4c5   :  { %330 = vrot.lane.b32.xlu0 %v1834_v52, %s1993_s1 }
 0x537   :  { %v331_v53 = vpop.permute.xlu0 %330 }
 0x538   :  { %v333_v54 = vmul.f32 %v331_v53, %v315_v44  ;;  %v168_v44 = vadd.f32 %v2123_v8, %v2162_v57 }
 0x53a   :  { %v2156_v55 = vpack.c.bf16 %v333_v54, %v333_v54 }
 0x53c   :  { %342 = vrot.lane.b32.xlu1 %v2156_v55, %s1998_s3 }
 0x5ae   :  { %v343_v60 = vpop.permute.xlu1 %342 }
 0x5af   :  { %1674 = vmatmul.mubr.msk.bf16.vlgmr.msra.gmra.mrb[8].mxu0 %vm194_vm4, %v343_v60 }
 0x5b0   :  { %1686 = vmatpush3.bf16.msra.mxu0 %v2089_v3  ;;  %1689 = vmatprep.mubr.msk.bf16.mxu0 %vm1996_vm0, %v1995_v0 }
 0x5b1   :  { %1687 = vmatprep.subr.bf16.mxu0 %v1995_v0 }
 0x5b4   :  { %1688 = vmatpush3.bf16.msra.mxu0 %v2104_v6 }
 0x5b5   :  { %1701 = vmatprep.subr.bf16.mxu0 %v1995_v0 }
 0x682   :  { %v381_v62 = vpop.f32.mrb[8].mxu0 }
 0x683   :  { %v387_v63 = vadd.f32 %v381_v62, %v160_v61  ;;  %v1675_v1 = vpop.f32.mrb[9].mxu0 }
 0x684   :  { %v384_v2 = vpop.f32.mrb[10].mxu0 }
 0x685   :  { %1835 = vtanh.f32 %v387_v63  ;;  %v1676_v4 = vpop.f32.mrb[11].mxu0  ;;  %v388_v10 = vmul.f32 0.5, %v387_v63 }
 0x687   :  { %1837 = vtanh.f32 %v388_v10 }
 0x68f   :  { %v1836_v5 = vpop.eup %1835 }
 0x690   :  { %395 = vrot.lane.b32.xlu0 %v1836_v5, %s1993_s1 }
 0x691   :  { %v1838_v11 = vpop.eup %1837 }
 0x692   :  { %v390_v13 = vmul.f32 0.5, %v1838_v11  ;;  %v171_v11 = vadd.f32 %v2123_v8, %v2166_v59 }
 0x694   :  { %v391_v14 = vadd.f32 0.5, %v390_v13 }
 0x696   :  { %v393_v17 = vmul.f32 %v391_v14, %v327_v49 }
 0x702   :  { %v396_v15 = vpop.permute.xlu0 %395 }
 0x703   :  { %v398_v16 = vmul.f32 %v396_v15, %v391_v14 }
 0x705   :  { %400 = vrot.lane.b32.xlu1 %v398_v16, %s1998_s3 }
 0x777   :  { %v401_v9 = vpop.permute.xlu1 %400 }
 0x778   :  { %v403_v18 = vadd.f32 %v401_v9, %v393_v17 }
 0x77a   :  { %1839 = vtanh.f32 %v403_v18 }
 0x784   :  { %v1840_v19 = vpop.eup %1839 }
 0x785   :  { %406 = vrot.lane.b32.xlu0 %v1840_v19, %s1993_s1 }
 0x7f7   :  { %v407_v20 = vpop.permute.xlu0 %406 }
 0x7f8   :  { %v409_v21 = vmul.f32 %v407_v20, %v391_v14 }
 0x7fa   :  { %v410_v22 = vpack.c.bf16 %v409_v21, %v409_v21 }
 0x7fc   :  { %412 = vrot.lane.b32.xlu1 %v410_v22, %s1998_s3 }
 0x86e   :  { %v413_v23 = vpop.permute.xlu1 %412 }
 0x86f   :  { %415 = vst.msk [vmem:[#allocation2 + $0x8] sm:$0xf] %vm266_vm3, %v413_v23  ;;  %1682 = vmatmul.mubr.msk.bf16.vlgmr.msra.gmra.mrb[8].mxu1 %vm194_vm4, %v413_v23 }
 0x870   :  { %1694 = vmatpush3.bf16.msra.mxu1 %v2089_v3  ;;  %1697 = vmatprep.mubr.msk.bf16.mxu1 %vm1996_vm0, %v1995_v0 }
 0x871   :  { %1695 = vmatprep.subr.bf16.mxu1 %v1995_v0 }
 0x874   :  { %1696 = vmatpush3.bf16.msra.mxu1 %v2104_v6 }
 0x875   :  { %1709 = vmatprep.subr.bf16.mxu1 %v1995_v0 }
 0x942   :  { %v453_v25 = vpop.f32.mrb[8].mxu1 }
 0x943   :  { %v459_v26 = vadd.f32 %v453_v25, %v163_v24  ;;  %v1683_v27 = vpop.f32.mrb[9].mxu1 }
 0x944   :  { %v456_v28 = vpop.f32.mrb[10].mxu1 }
 0x945   :  { %1841 = vtanh.f32 %v459_v26  ;;  %v1684_v29 = vpop.f32.mrb[11].mxu1  ;;  %v460_v31 = vmul.f32 0.5, %v459_v26 }
 0x946   :  { %v176_v29 = vadd.f32 %v2160_v56, %v2123_v8  ;;  %v336_v56 = vrot.slane %v2156_v55, 4  ;;  %v1818_v55 = vld [vmem:[%s2421_s4 + $0x8] sm:$0xff]  }
 0x947   :  { %1843 = vtanh.f32 %v460_v31 }
 0x94f   :  { %v1842_v30 = vpop.eup %1841 }
 0x950   :  { %467 = vrot.lane.b32.xlu0 %v1842_v30, %s1993_s1 }
 0x951   :  { %v1844_v32 = vpop.eup %1843 }
 0x952   :  { %v462_v33 = vmul.f32 0.5, %v1844_v32 }
 0x954   :  { %v463_v34 = vadd.f32 0.5, %v462_v33 }
 0x956   :  { %v465_v37 = vmul.f32 %v463_v34, %v403_v18 }
 0x9c2   :  { %v468_v35 = vpop.permute.xlu0 %467 }
 0x9c3   :  { %v470_v36 = vmul.f32 %v468_v35, %v463_v34 }
 0x9c5   :  { %472 = vrot.lane.b32.xlu1 %v470_v36, %s1998_s3 }
 0xa37   :  { %v473_v12 = vpop.permute.xlu1 %472 }
 0xa38   :  { %v475_v38 = vadd.f32 %v473_v12, %v465_v37 }
 0xa3a   :  { %1845 = vtanh.f32 %v475_v38 }
 0xa44   :  { %v1846_v39 = vpop.eup %1845 }
 0xa45   :  { %478 = vrot.lane.b32.xlu0 %v1846_v39, %s1993_s1 }
 0xab7   :  { %v479_v40 = vpop.permute.xlu0 %478 }
 0xab8   :  { %v481_v41 = vmul.f32 %v479_v40, %v463_v34 }
 0xaba   :  { %v2194_v42 = vpack.c.bf16 %v481_v41, %v481_v41 }
 0xabc   :  { %489 = vrot.lane.b32.xlu1 %v2194_v42, %s1998_s3 }
 0xb2e   :  { %v490_v43 = vpop.permute.xlu1 %489 }
 0xb2f   :  { %1690 = vmatmul.mubr.msk.bf16.vlgmr.msra.gmra.mrb[12].mxu0 %vm194_vm4, %v490_v43 }
 0xb30   :  { %1702 = vmatpush3.bf16.msra.mxu0 %v2089_v3  ;;  %1705 = vmatprep.mubr.msk.bf16.mxu0 %vm1996_vm0, %v1995_v0 }
 0xb31   :  { %1703 = vmatprep.subr.bf16.mxu0 %v1995_v0 }
 0xb34   :  { %1704 = vmatpush3.bf16.msra.mxu0 %v2104_v6 }
 0xc02   :  { %v528_v45 = vpop.f32.mrb[12].mxu0 }
 0xc03   :  { %v534_v46 = vadd.f32 %v528_v45, %v168_v44  ;;  %v1691_v47 = vpop.f32.mrb[13].mxu0  ;;  %v1817_v45 = vld [vmem:[%s2421_s4] sm:$0xff]  }
 0xc04   :  { %v531_v48 = vpop.f32.mrb[14].mxu0  ;;  %1717 = vmatprep.subr.bf16.mxu0 %v1817_v45 }
 0xc05   :  { %1847 = vtanh.f32 %v534_v46  ;;  %v1692_v49 = vpop.f32.mrb[15].mxu0  ;;  %v535_v51 = vmul.f32 0.5, %v534_v46 }
 0xc06   :  { %v484_v49 = vrot.slane %v2194_v42, 4  ;;  %v2262_v42 = vld [vmem:[%s2422_s5 + $0x8] sm:$0xff]  }
 0xc07   :  { %1849 = vtanh.f32 %v535_v51 }
 0xc0f   :  { %v1848_v50 = vpop.eup %1847 }
 0xc10   :  { %542 = vrot.lane.b32.xlu0 %v1848_v50, %s1993_s1 }
 0xc11   :  { %v1850_v52 = vpop.eup %1849 }
 0xc12   :  { %v537_v53 = vmul.f32 0.5, %v1850_v52 }
 0xc14   :  { %v538_v54 = vadd.f32 0.5, %v537_v53 }
 0xc16   :  { %v540_v62 = vmul.f32 %v538_v54, %v475_v38 }
 0xc82   :  { %v543_v60 = vpop.permute.xlu0 %542 }
 0xc83   :  { %v545_v61 = vmul.f32 %v543_v60, %v538_v54  ;;  %v2254_v60 = vld [vmem:[%s2422_s5] sm:$0xff]  }
 0xc85   :  { %547 = vrot.lane.b32.xlu1 %v545_v61, %s1998_s3 }
 0xcf7   :  { %v548_v57 = vpop.permute.xlu1 %547 }
 0xcf8   :  { %v550_v63 = vadd.f32 %v548_v57, %v540_v62 }
 0xcfa   :  { %1851 = vtanh.f32 %v550_v63 }
 0xd04   :  { %v1852_v1 = vpop.eup %1851 }
 0xd05   :  { %553 = vrot.lane.b32.xlu0 %v1852_v1, %s1993_s1 }
 0xd77   :  { %v554_v2 = vpop.permute.xlu0 %553 }
 0xd78   :  { %v556_v4 = vmul.f32 %v554_v2, %v538_v54 }
 0xd7a   :  { %v557_v5 = vpack.c.bf16 %v556_v4, %v556_v4 }
 0xd7c   :  { %559 = vrot.lane.b32.xlu1 %v557_v5, %s1998_s3 }
 0xdee   :  { %v560_v10 = vpop.permute.xlu1 %559 }
 0xdef   :  { %562 = vst.msk [vmem:[#allocation2 + $0x10] sm:$0xf] %vm266_vm3, %v560_v10  ;;  %1698 = vmatmul.mubr.msk.bf16.vlgmr.msra.gmra.mrb[12].mxu1 %vm194_vm4, %v560_v10 }
 0xdf0   :  { %1710 = vmatpush3.bf16.msra.mxu1 %v2089_v3  ;;  %1713 = vmatprep.mubr.msk.bf16.mxu1 %vm1996_vm0, %v1995_v0 }
 0xdf1   :  { %1711 = vmatprep.subr.bf16.mxu1 %v1995_v0 }
 0xdf4   :  { %1712 = vmatpush3.bf16.msra.mxu1 %v2104_v6 }
 0xdf5   :  { %1729 = vmatprep.subr.bf16.mxu1 %v1995_v0 }
 0xec2   :  { %v600_v13 = vpop.f32.mrb[12].mxu1 }
 0xec3   :  { %v606_v14 = vadd.f32 %v600_v13, %v171_v11  ;;  %v1699_v15 = vpop.f32.mrb[13].mxu1  ;;  %v2292_v13 = vld [vmem:[%s2423_s6] ss:$0 sm:$0xff] }
 0xec4   :  { %v603_v16 = vpop.f32.mrb[14].mxu1 }
 0xec5   :  { %1853 = vtanh.f32 %v606_v14  ;;  %v1700_v17 = vpop.f32.mrb[15].mxu1  ;;  %v607_v3 = vmul.f32 0.5, %v606_v14 }
 0xec7   :  { %1855 = vtanh.f32 %v607_v3 }
 0xecf   :  { %v1854_v9 = vpop.eup %1853 }
 0xed0   :  { %614 = vrot.lane.b32.xlu0 %v1854_v9, %s1993_s1 }
 0xed1   :  { %v1856_v18 = vpop.eup %1855 }
 0xed2   :  { %v609_v19 = vmul.f32 0.5, %v1856_v18 }
 0xed4   :  { %v610_v20 = vadd.f32 0.5, %v609_v19 }
 0xed6   :  { %v612_v22 = vmul.f32 %v610_v20, %v550_v63 }
 0xf42   :  { %v615_v6 = vpop.permute.xlu0 %614 }
 0xf43   :  { %v617_v21 = vmul.f32 %v615_v6, %v610_v20 }
 0xf45   :  { %619 = vrot.lane.b32.xlu1 %v617_v21, %s1998_s3 }
 0xfb7   :  { %v620_v59 = vpop.permute.xlu1 %619 }
 0xfb8   :  { %v622_v23 = vadd.f32 %v620_v59, %v612_v22 }
 0xfba   :  { %1857 = vtanh.f32 %v622_v23 }
 0xfc4   :  { %v1858_v24 = vpop.eup %1857 }
 0xfc5   :  { %625 = vrot.lane.b32.xlu0 %v1858_v24, %s1993_s1 }
0x1037   :  { %v626_v25 = vpop.permute.xlu0 %625 }
0x1038   :  { %v628_v26 = vmul.f32 %v626_v25, %v610_v20 }
0x103a   :  { %v2223_v27 = vpack.c.bf16 %v628_v26, %v628_v26 }
0x103c   :  { %636 = vrot.lane.b32.xlu1 %v2223_v27, %s1998_s3 }
0x10ae   :  { %v637_v28 = vpop.permute.xlu1 %636 }
0x10af   :  { %1706 = vmatmul.mubr.msk.bf16.vlgmr.msra.gmra.mrb[16].mxu0 %vm194_vm4, %v637_v28 }
0x10b0   :  { %1718 = vmatpush3.bf16.msra.mxu0 %v1817_v45 }
0x10b1   :  { %1719 = vmatprep.subr.bf16.mxu0 %v1818_v55 }
0x10b4   :  { %1720 = vmatpush3.bf16.msra.mxu0 %v1818_v55 }
0x10b5   :  { %1745 = vmatprep.subr.bf16.mxu0 %v1995_v0 }
0x1182   :  { %v675_v30 = vpop.f32.mrb[16].mxu0 }
0x1183   :  { %v681_v31 = vadd.f32 %v675_v30, %v176_v29  ;;  %v1707_v32 = vpop.f32.mrb[17].mxu0 }
0x1184   :  { %v678_v33 = vpop.f32.mrb[18].mxu0 }
0x1185   :  { %1859 = vtanh.f32 %v681_v31  ;;  %v1708_v34 = vpop.f32.mrb[19].mxu0  ;;  %v682_v36 = vmul.f32 0.5, %v681_v31 }
0x1187   :  { %1861 = vtanh.f32 %v682_v36 }
0x118f   :  { %v1860_v35 = vpop.eup %1859 }
0x1190   :  { %689 = vrot.lane.b32.xlu0 %v1860_v35, %s1993_s1 }
0x1191   :  { %v1862_v37 = vpop.eup %1861 }
0x1192   :  { %v684_v12 = vmul.f32 0.5, %v1862_v37 }
0x1194   :  { %v685_v38 = vadd.f32 0.5, %v684_v12 }
0x1196   :  { %v687_v41 = vmul.f32 %v685_v38, %v622_v23 }
0x1202   :  { %v690_v39 = vpop.permute.xlu0 %689 }
0x1203   :  { %v692_v40 = vmul.f32 %v690_v39, %v685_v38 }
0x1205   :  { %694 = vrot.lane.b32.xlu1 %v692_v40, %s1998_s3  ;;  %v631_v40 = vrot.slane %v2223_v27, 4 }
0x1209   :  { %337 = vrot.lane.b32.xlu1 %v336_v56, %s1998_s3 }
0x1277   :  { %v695_v43 = vpop.permute.xlu1 %694 }
0x1278   :  { %v2234_v44 = vadd.f32 %v695_v43, %v687_v41 }
0x127a   :  { %1863 = vtanh.f32 %v2234_v44 }
0x127b   :  { %v338_v46 = vpop.permute.xlu1 %337 }
0x127c   :  { %341 = vst.msk [vmem:[#allocation2] sm:$0xf0] %vm340_vm5, %v338_v46 }
0x1283   :  { %v783_v47 = vld [vmem:[#allocation2] sm:$0xff] }
0x1284   :  { %v1864_v48 = vpop.eup %1863  ;;  %1721 = vmatprep.mubr.msk.bf16.mxu0 %vm194_vm4, %v783_v47 }
0x1285   :  { %700 = vrot.lane.b32.xlu0 %v1864_v48, %s1993_s1 }
0x1289   :  { %485 = vrot.lane.b32.xlu0 %v484_v49, %s1998_s3 }
0x12f7   :  { %v701_v50 = vpop.permute.xlu0 %700 }
0x12f8   :  { %v703_v51 = vmul.f32 %v701_v50, %v685_v38 }
0x12fa   :  { %v704_v52 = vpack.c.bf16 %v703_v51, %v703_v51 }
0x12fb   :  { %v486_v53 = vpop.permute.xlu0 %485 }
0x12fc   :  { %488 = vst.msk [vmem:[#allocation2 + $0x8] sm:$0xf0] %vm340_vm5, %v486_v53  ;;  %706 = vrot.lane.b32.xlu1 %v704_v52, %s1998_s3 }
0x1303   :  { %v784_v54 = vld [vmem:[#allocation2 + $0x8] sm:$0xff] }
0x1304   :  { %1722 = vmatmul.mubr.msk.bf16.vlgmr.msra.gmra.mrb[20].mxu0 %vm194_vm4, %v784_v54 }
0x1305   :  { %1746 = vmatpush3.bf16.msra.mxu0 %v2254_v60 }
0x1306   :  { %1747 = vmatprep.subr.bf16.mxu0 %v1995_v0 }
0x1309   :  { %1748 = vmatpush3.bf16.msra.mxu0 %v2262_v42 }
0x130a   :  { %1761 = vmatprep.subr.bf16.mxu0 %v1995_v0 }
0x136e   :  { %v707_v61 = vpop.permute.xlu1 %706 }
0x136f   :  { %709 = vst.msk [vmem:[#allocation2 + $0x18] sm:$0xf] %vm266_vm3, %v707_v61  ;;  %1714 = vmatmul.mubr.msk.bf16.vlgmr.msra.gmra.mrb[16].mxu1 %vm194_vm4, %v707_v61 }
0x1370   :  { %1730 = vmatpush3.bf16.msra.mxu1 %v2254_v60  ;;  %1733 = vmatprep.mubr.msk.bf16.mxu1 %vm1996_vm0, %v1995_v0 }
0x1371   :  { %1731 = vmatprep.subr.bf16.mxu1 %v1995_v0 }
0x1374   :  { %1732 = vmatpush3.bf16.msra.mxu1 %v2262_v42 }
0x1375   :  { %1737 = vmatprep.subr.bf16.mxu1 %v1995_v0 }
0x1377   :  { %1734 = vmatmul.mubr.bf16.vlgmr.msra.gmra.mrb[20].mxu1 %v1997_v7  ;;  %v179_v7 = vadd.f32 %v2164_v58, %v2123_v8 }
0x1378   :  { %1738 = vmatpush3.bf16.msra.mxu1 %v2254_v60  ;;  %1741 = vmatprep.mubr.msk.bf16.mxu1 %vm1996_vm0, %v1995_v0 }
0x1379   :  { %1739 = vmatprep.subr.bf16.mxu1 %v1995_v0 }
0x137c   :  { %1740 = vmatpush3.bf16.msra.mxu1 %v2262_v42 }
0x137d   :  { %1753 = vmatprep.subr.bf16.mxu1 %v1995_v0 }
0x13d7   :  { %v2281_v62 = vpop.f32.mrb[20].mxu0 }
0x13d8   :  { %v860_v57 = vpop.f32.mrb[21].mxu0 }
0x13d9   :  { %v2283_v63 = vpop.f32.mrb[22].mxu0  ;;  %v861_v14 = vadd.f32 %v2292_v13, %v860_v57 }
0x13da   :  { %v2285_v1 = vpop.f32.mrb[23].mxu0 }
0x1442   :  { %v747_v2 = vpop.f32.mrb[16].mxu1 }
0x1443   :  { %v753_v4 = vadd.f32 %v747_v2, %v179_v7  ;;  %v1715_v5 = vpop.f32.mrb[17].mxu1 }
0x1444   :  { %v750_v10 = vpop.f32.mrb[18].mxu1 }
0x1445   :  { %v1716_v11 = vpop.f32.mrb[19].mxu1  ;;  %v754_v26 = vmul.f32 0.5, %v753_v4 }
0x144a   :  { %v937_v15 = vpop.f32.mrb[20].mxu1 }
0x144b   :  { %v943_v16 = vadd.f32 %v937_v15, %v861_v14  ;;  %v1735_v17 = vpop.f32.mrb[21].mxu1 }
0x144c   :  { %v940_v9 = vpop.f32.mrb[22].mxu1 }
0x144d   :  { %1865 = vtanh.f32 %v943_v16  ;;  %v1736_v3 = vpop.f32.mrb[23].mxu1  ;;  %v944_v8 = vmul.f32 0.5, %v943_v16 }
0x144f   :  { %1867 = vtanh.f32 %v944_v8 }
0x1457   :  { %v1866_v18 = vpop.eup %1865 }
0x1458   :  { %951 = vrot.lane.b32.xlu0 %v1866_v18, %s1993_s1 }
0x1459   :  { %v1868_v58 = vpop.eup %1867 }
0x145a   :  { %v946_v19 = vmul.f32 0.5, %v1868_v58  ;;  %v869_v58 = vadd.f32 %v2281_v62, %v2292_v13 }
0x145c   :  { %v947_v20 = vadd.f32 0.5, %v946_v19 }
0x145e   :  { %v949_v22 = vmul.f32 0.0, %v947_v20 }
0x14ca   :  { %v952_v6 = vpop.permute.xlu0 %951 }
0x14cb   :  { %v954_v21 = vmul.f32 %v952_v6, %v947_v20 }
0x14cd   :  { %956 = vrot.lane.b32.xlu1 %v954_v21, %s1998_s3 }
0x153f   :  { %v957_v59 = vpop.permute.xlu1 %956 }
0x1540   :  { %v959_v23 = vadd.f32 %v957_v59, %v949_v22 }
0x1542   :  { %1869 = vtanh.f32 %v959_v23 }
0x1543   :  { %1871 = vtanh.f32 %v753_v4 }
0x1544   :  { %1873 = vtanh.f32 %v754_v26 }
0x154c   :  { %v1870_v24 = vpop.eup %1869 }
0x154d   :  { %962 = vrot.lane.b32.xlu0 %v1870_v24, %s1993_s1  ;;  %v1872_v25 = vpop.eup %1871 }
0x154e   :  { %v1874_v28 = vpop.eup %1873 }
0x154f   :  { %v756_v29 = vmul.f32 0.5, %v1874_v28 }
0x1551   :  { %761 = vrot.lane.b32.xlu0 %v1872_v25, %s1993_s1  ;;  %v757_v33 = vadd.f32 0.5, %v756_v29 }
0x1553   :  { %v759_v37 = vmul.f32 %v757_v33, %v2234_v44  ;;  %v864_v44 = vadd.f32 %v2292_v13, %v2285_v1 }
0x15bf   :  { %v963_v30 = vpop.permute.xlu0 %962 }
0x15c0   :  { %v965_v31 = vmul.f32 %v963_v30, %v947_v20 }
0x15c2   :  { %v966_v32 = vpack.c.bf16 %v965_v31, %v965_v31 }
0x15c3   :  { %v762_v34 = vpop.permute.xlu0 %761 }
0x15c4   :  { %v764_v35 = vmul.f32 %v762_v34, %v757_v33  ;;  %968 = vrot.lane.b32.xlu1 %v966_v32, %s1998_s3 }
0x15c6   :  { %766 = vrot.lane.b32.xlu0 %v764_v35, %s1998_s3 }
0x1636   :  { %v969_v36 = vpop.permute.xlu1 %968 }
0x1637   :  { %1742 = vmatmul.mubr.msk.bf16.vlgmr.msra.gmra.mrb[24].mxu1 %vm194_vm4, %v969_v36 }
0x1638   :  { %v767_v12 = vpop.permute.xlu0 %766  ;;  %1754 = vmatpush3.bf16.msra.mxu1 %v2254_v60  ;;  %1757 = vmatprep.mubr.msk.bf16.mxu1 %vm1996_vm0, %v1995_v0 }
0x1639   :  { %v769_v38 = vadd.f32 %v767_v12, %v759_v37  ;;  %1755 = vmatprep.subr.bf16.mxu1 %v1995_v0  ;;  %v872_v37 = vadd.f32 %v2283_v63, %v2292_v13 }
0x163b   :  { %1875 = vtanh.f32 %v769_v38 }
0x163c   :  { %1756 = vmatpush3.bf16.msra.mxu1 %v2262_v42 }
0x163d   :  { %1769 = vmatprep.subr.bf16.mxu1 %v1995_v0 }
0x1645   :  { %v1876_v39 = vpop.eup %1875 }
0x1646   :  { %772 = vrot.lane.b32.xlu0 %v1876_v39, %s1993_s1 }
0x164a   :  { %632 = vrot.lane.b32.xlu0 %v631_v40, %s1998_s3 }
0x16b8   :  { %v773_v56 = vpop.permute.xlu0 %772 }
0x16b9   :  { %v775_v7 = vmul.f32 %v773_v56, %v757_v33 }
0x16bb   :  { %v776_v2 = vpack.c.bf16 %v775_v7, %v775_v7 }
0x16bc   :  { %v633_v41 = vpop.permute.xlu0 %632 }
0x16bd   :  { %635 = vst.msk [vmem:[#allocation2 + $0x10] sm:$0xf0] %vm340_vm5, %v633_v41  ;;  %v778_v5 = vrot.slane %v776_v2, 4 }
0x16c4   :  { %v785_v43 = vld [vmem:[#allocation2 + $0x10] sm:$0xff] }
0x16c5   :  { %1725 = vmatprep.mubr.msk.bf16.mxu0 %vm194_vm4, %v785_v43 }
0x170a   :  { %v1007_v45 = vpop.f32.mrb[24].mxu1 }
0x170b   :  { %v1013_v46 = vadd.f32 %v1007_v45, %v864_v44  ;;  %v1743_v55 = vpop.f32.mrb[25].mxu1 }
0x170c   :  { %v1010_v47 = vpop.f32.mrb[26].mxu1 }
0x170d   :  { %1877 = vtanh.f32 %v1013_v46  ;;  %v1744_v48 = vpop.f32.mrb[27].mxu1  ;;  %v1014_v27 = vmul.f32 0.5, %v1013_v46 }
0x170f   :  { %1879 = vtanh.f32 %v1014_v27 }
0x1717   :  { %v1878_v49 = vpop.eup %1877 }
0x1718   :  { %1021 = vrot.lane.b32.xlu1 %v1878_v49, %s1993_s1 }
0x1719   :  { %v1880_v50 = vpop.eup %1879 }
0x171a   :  { %v1016_v51 = vmul.f32 0.5, %v1880_v50 }
0x171c   :  { %v1017_v52 = vadd.f32 0.5, %v1016_v51 }
0x171e   :  { %v1019_v61 = vmul.f32 %v1017_v52, %v959_v23 }
0x178a   :  { %v1022_v53 = vpop.permute.xlu1 %1021 }
0x178b   :  { %v1024_v54 = vmul.f32 %v1022_v53, %v1017_v52 }
0x178d   :  { %1026 = vrot.lane.b32.xlu1 %v1024_v54, %s1998_s3 }
0x17ff   :  { %v1027_v57 = vpop.permute.xlu1 %1026 }
0x1800   :  { %v1029_v1 = vadd.f32 %v1027_v57, %v1019_v61 }
0x1802   :  { %1881 = vtanh.f32 %v1029_v1 }
0x180c   :  { %v1882_v4 = vpop.eup %1881 }
0x180d   :  { %1032 = vrot.lane.b32.xlu1 %v1882_v4, %s1993_s1 }
0x1811   :  { %779 = vrot.lane.b32.xlu1 %v778_v5, %s1998_s3 }
0x187f   :  { %v1033_v10 = vpop.permute.xlu1 %1032 }
0x1880   :  { %v1035_v11 = vmul.f32 %v1033_v10, %v1017_v52 }
0x1882   :  { %v1036_v14 = vpack.c.bf16 %v1035_v11, %v1035_v11 }
0x1883   :  { %v780_v15 = vpop.permute.xlu1 %779 }
0x1884   :  { %782 = vst.msk [vmem:[#allocation2 + $0x18] sm:$0xf0] %vm340_vm5, %v780_v15  ;;  %1038 = vrot.lane.b32.xlu0 %v1036_v14, %s1998_s3 }
0x188b   :  { %v786_v16 = vld [vmem:[#allocation2 + $0x18] sm:$0xff] }
0x188c   :  { %1726 = vmatmul.mubr.msk.bf16.gmra.mrb[24].mxu0 %vm194_vm4, %v786_v16 }
0x188d   :  { %1749 = vmatprep.mubr.msk.bf16.mxu0 %vm1996_vm0, %v1995_v0 }
0x18f6   :  { %v1039_v17 = vpop.permute.xlu0 %1038 }
0x18f7   :  { %1750 = vmatmul.mubr.msk.bf16.vlgmr.msra.gmra.mrb[28].mxu0 %vm194_vm4, %v1039_v17 }
0x18f8   :  { %1762 = vmatpush3.bf16.msra.mxu0 %v2254_v60  ;;  %1765 = vmatprep.mubr.msk.bf16.mxu0 %vm1996_vm0, %v1995_v0 }
0x18f9   :  { %1763 = vmatprep.subr.bf16.mxu0 %v1995_v0 }
0x18fc   :  { %1764 = vmatpush3.bf16.msra.mxu0 %v2262_v42 }
0x18fd   :  { %1777 = vmatprep.subr.bf16.mxu0 %v1995_v0 }
0x195f   :  { %v2332_v9 = vpop.f32.mrb[24].mxu0 }
0x1960   :  { %v2334_v3 = vpop.f32.mrb[25].mxu0 }
0x1961   :  { %v2336_v18 = vpop.f32.mrb[26].mxu0  ;;  %v877_v54 = vadd.f32 %v2292_v13, %v2334_v3 }
0x1962   :  { %v2338_v8 = vpop.f32.mrb[27].mxu0 }
0x19ca   :  { %v1077_v19 = vpop.f32.mrb[28].mxu0 }
0x19cb   :  { %v1083_v20 = vadd.f32 %v1077_v19, %v869_v58  ;;  %v1751_v6 = vpop.f32.mrb[29].mxu0 }
0x19cc   :  { %v1080_v21 = vpop.f32.mrb[30].mxu0 }
0x19cd   :  { %1883 = vtanh.f32 %v1083_v20  ;;  %v1752_v22 = vpop.f32.mrb[31].mxu0  ;;  %v1084_v23 = vmul.f32 0.5, %v1083_v20 }
0x19cf   :  { %1885 = vtanh.f32 %v1084_v23 }
0x19d7   :  { %v1884_v59 = vpop.eup %1883 }
0x19d8   :  { %1091 = vrot.lane.b32.xlu1 %v1884_v59, %s1993_s1  ;;  %v880_v59 = vadd.f32 %v2292_v13, %v2338_v8 }
0x19d9   :  { %v1886_v24 = vpop.eup %1885 }
0x19da   :  { %v1086_v25 = vmul.f32 0.5, %v1886_v24 }
0x19dc   :  { %v1087_v26 = vadd.f32 0.5, %v1086_v25 }
0x19de   :  { %v1089_v30 = vmul.f32 %v1087_v26, %v1029_v1 }
0x1a4a   :  { %v1092_v28 = vpop.permute.xlu1 %1091 }
0x1a4b   :  { %v1094_v29 = vmul.f32 %v1092_v28, %v1087_v26 }
0x1a4d   :  { %1096 = vrot.lane.b32.xlu0 %v1094_v29, %s1998_s3 }
0x1abf   :  { %v1097_v62 = vpop.permute.xlu0 %1096 }
0x1ac0   :  { %v1099_v31 = vadd.f32 %v1097_v62, %v1089_v30 }
0x1ac2   :  { %1887 = vtanh.f32 %v1099_v31 }
0x1acc   :  { %v1888_v32 = vpop.eup %1887 }
0x1acd   :  { %1102 = vrot.lane.b32.xlu1 %v1888_v32, %s1993_s1 }
0x1b3f   :  { %v1103_v33 = vpop.permute.xlu1 %1102 }
0x1b40   :  { %v1105_v34 = vmul.f32 %v1103_v33, %v1087_v26 }
0x1b42   :  { %v1106_v35 = vpack.c.bf16 %v1105_v34, %v1105_v34 }
0x1b44   :  { %1108 = vrot.lane.b32.xlu0 %v1106_v35, %s1998_s3 }
0x1bb6   :  { %v1109_v36 = vpop.permute.xlu0 %1108 }
0x1bb7   :  { %1758 = vmatmul.mubr.msk.bf16.vlgmr.msra.gmra.mrb[28].mxu1 %vm194_vm4, %v1109_v36 }
0x1bb8   :  { %1770 = vmatpush3.bf16.msra.mxu1 %v2254_v60  ;;  %1773 = vmatprep.mubr.msk.bf16.mxu1 %vm1996_vm0, %v1995_v0 }
0x1bb9   :  { %1771 = vmatprep.subr.bf16.mxu1 %v1995_v0 }
0x1bbc   :  { %1772 = vmatpush3.bf16.msra.mxu1 %v2262_v42 }
0x1bbd   :  { %1785 = vmatprep.subr.bf16.mxu1 %v1995_v0 }
0x1c8a   :  { %v1147_v12 = vpop.f32.mrb[28].mxu1 }
0x1c8b   :  { %v1153_v38 = vadd.f32 %v1147_v12, %v872_v37  ;;  %v1759_v39 = vpop.f32.mrb[29].mxu1 }
0x1c8c   :  { %v1150_v40 = vpop.f32.mrb[30].mxu1  ;;  %v885_v39 = vadd.f32 %v2332_v9, %v2292_v13 }
0x1c8d   :  { %1889 = vtanh.f32 %v1153_v38  ;;  %v1760_v56 = vpop.f32.mrb[31].mxu1  ;;  %v1154_v43 = vmul.f32 0.5, %v1153_v38 }
0x1c8f   :  { %1891 = vtanh.f32 %v1154_v43 }
0x1c97   :  { %v1890_v41 = vpop.eup %1889 }
0x1c98   :  { %1161 = vrot.lane.b32.xlu1 %v1890_v41, %s1993_s1 }
0x1c99   :  { %v1892_v44 = vpop.eup %1891 }
0x1c9a   :  { %v1156_v45 = vmul.f32 0.5, %v1892_v44 }
0x1c9c   :  { %v1157_v46 = vadd.f32 0.5, %v1156_v45 }
0x1c9e   :  { %v1159_v48 = vmul.f32 %v1157_v46, %v1099_v31 }
0x1d0a   :  { %v1162_v55 = vpop.permute.xlu1 %1161 }
0x1d0b   :  { %v1164_v47 = vmul.f32 %v1162_v55, %v1157_v46 }
0x1d0d   :  { %1166 = vrot.lane.b32.xlu0 %v1164_v47, %s1998_s3 }
0x1d7f   :  { %v1167_v63 = vpop.permute.xlu0 %1166 }
0x1d80   :  { %v1169_v49 = vadd.f32 %v1167_v63, %v1159_v48 }
0x1d82   :  { %1893 = vtanh.f32 %v1169_v49 }
0x1d8c   :  { %v1894_v27 = vpop.eup %1893 }
0x1d8d   :  { %1172 = vrot.lane.b32.xlu1 %v1894_v27, %s1993_s1 }
0x1dff   :  { %v1173_v50 = vpop.permute.xlu1 %1172 }
0x1e00   :  { %v1175_v51 = vmul.f32 %v1173_v50, %v1157_v46 }
0x1e02   :  { %v1176_v52 = vpack.c.bf16 %v1175_v51, %v1175_v51 }
0x1e04   :  { %1178 = vrot.lane.b32.xlu0 %v1176_v52, %s1998_s3 }
0x1e76   :  { %v1179_v53 = vpop.permute.xlu0 %1178 }
0x1e77   :  { %1766 = vmatmul.mubr.msk.bf16.vlgmr.msra.gmra.mrb[32].mxu0 %vm194_vm4, %v1179_v53 }
0x1e78   :  { %1778 = vmatpush3.bf16.msra.mxu0 %v2254_v60  ;;  %1781 = vmatprep.mubr.msk.bf16.mxu0 %vm1996_vm0, %v1995_v0 }
0x1e79   :  { %1779 = vmatprep.subr.bf16.mxu0 %v1995_v0 }
0x1e7c   :  { %1780 = vmatpush3.bf16.msra.mxu0 %v2262_v42 }
0x1e7d   :  { %1793 = vmatprep.subr.bf16.mxu0 %v1995_v0 }
0x1f4a   :  { %v1217_v61 = vpop.f32.mrb[32].mxu0 }
0x1f4b   :  { %v1223_v57 = vadd.f32 %v1217_v61, %v877_v54  ;;  %v1767_v1 = vpop.f32.mrb[33].mxu0 }
0x1f4c   :  { %v1220_v7 = vpop.f32.mrb[34].mxu0 }
0x1f4d   :  { %1895 = vtanh.f32 %v1223_v57  ;;  %v1768_v2 = vpop.f32.mrb[35].mxu0  ;;  %v1224_v5 = vmul.f32 0.5, %v1223_v57  ;;  %v888_v57 = vadd.f32 %v2336_v18, %v2292_v13 }
0x1f4f   :  { %1897 = vtanh.f32 %v1224_v5 }
0x1f57   :  { %v1896_v4 = vpop.eup %1895 }
0x1f58   :  { %1231 = vrot.lane.b32.xlu1 %v1896_v4, %s1993_s1 }
0x1f59   :  { %v1898_v10 = vpop.eup %1897 }
0x1f5a   :  { %v1226_v11 = vmul.f32 0.5, %v1898_v10 }
0x1f5c   :  { %v1227_v14 = vadd.f32 0.5, %v1226_v11 }
0x1f5e   :  { %v1229_v17 = vmul.f32 %v1227_v14, %v1169_v49 }
0x1fca   :  { %v1232_v15 = vpop.permute.xlu1 %1231 }
0x1fcb   :  { %v1234_v16 = vmul.f32 %v1232_v15, %v1227_v14 }
0x1fcd   :  { %1236 = vrot.lane.b32.xlu0 %v1234_v16, %s1998_s3 }
0x203f   :  { %v1237_v3 = vpop.permute.xlu0 %1236 }
0x2040   :  { %v1239_v58 = vadd.f32 %v1237_v3, %v1229_v17 }
0x2042   :  { %1899 = vtanh.f32 %v1239_v58 }
0x204c   :  { %v1900_v19 = vpop.eup %1899 }
0x204d   :  { %1242 = vrot.lane.b32.xlu1 %v1900_v19, %s1993_s1  ;;  %v1821_v19 = vld [vmem:[#allocation6] sm:$0xff]  }
0x20bf   :  { %v1243_v20 = vpop.permute.xlu1 %1242 }
0x20c0   :  { %v1245_v6 = vmul.f32 %v1243_v20, %v1227_v14  ;;  %v1822_v20 = vld [vmem:[#allocation6 + $0x8] sm:$0xff]  }
0x20c2   :  { %v1246_v21 = vpack.c.bf16 %v1245_v6, %v1245_v6 }
0x20c4   :  { %1248 = vrot.lane.b32.xlu0 %v1246_v21, %s1998_s3 }
0x2136   :  { %v1249_v22 = vpop.permute.xlu0 %1248 }
0x2137   :  { %1774 = vmatmul.mubr.msk.bf16.vlgmr.msra.gmra.mrb[32].mxu1 %vm194_vm4, %v1249_v22 }
0x2138   :  { %1786 = vmatpush3.bf16.msra.mxu1 %v2254_v60  ;;  %1789 = vmatprep.mubr.msk.bf16.mxu1 %vm1996_vm0, %v1995_v0 }
0x2139   :  { %1787 = vmatprep.subr.bf16.mxu1 %v1995_v0 }
0x213c   :  { %1788 = vmatpush3.bf16.msra.mxu1 %v2262_v42 }
0x220a   :  { %v1287_v23 = vpop.f32.mrb[32].mxu1 }
0x220b   :  { %v1293_v24 = vadd.f32 %v1287_v23, %v880_v59  ;;  %v1775_v25 = vpop.f32.mrb[33].mxu1 }
0x220c   :  { %v1290_v26 = vpop.f32.mrb[34].mxu1 }
0x220d   :  { %1901 = vtanh.f32 %v1293_v24  ;;  %v1776_v28 = vpop.f32.mrb[35].mxu1  ;;  %v1294_v60 = vmul.f32 0.5, %v1293_v24  ;;  %v1577_v24 = vld [vmem:[%s2425_s8] ss:$0 sm:$0xff] }
0x220f   :  { %1903 = vtanh.f32 %v1294_v60 }
0x2217   :  { %v1902_v29 = vpop.eup %1901 }
0x2218   :  { %1301 = vrot.lane.b32.xlu1 %v1902_v29, %s1993_s1 }
0x2219   :  { %v1904_v30 = vpop.eup %1903 }
0x221a   :  { %v1296_v62 = vmul.f32 0.5, %v1904_v30 }
0x221c   :  { %v1297_v31 = vadd.f32 0.5, %v1296_v62 }
0x221e   :  { %v1299_v42 = vmul.f32 %v1297_v31, %v1239_v58 }
0x228a   :  { %v1302_v32 = vpop.permute.xlu1 %1301 }
0x228b   :  { %v1304_v33 = vmul.f32 %v1302_v32, %v1297_v31 }
0x228d   :  { %1306 = vrot.lane.b32.xlu0 %v1304_v33, %s1998_s3 }
0x22ff   :  { %v1307_v8 = vpop.permute.xlu0 %1306 }
0x2300   :  { %v1309_v34 = vadd.f32 %v1307_v8, %v1299_v42 }
0x2302   :  { %1905 = vtanh.f32 %v1309_v34 }
0x230c   :  { %v1906_v35 = vpop.eup %1905 }
0x230d   :  { %1312 = vrot.lane.b32.xlu1 %v1906_v35, %s1993_s1 }
0x237f   :  { %v1313_v36 = vpop.permute.xlu1 %1312 }
0x2380   :  { %v1315_v37 = vmul.f32 %v1313_v36, %v1297_v31 }
0x2382   :  { %v1316_v12 = vpack.c.bf16 %v1315_v37, %v1315_v37 }
0x2384   :  { %1318 = vrot.lane.b32.xlu0 %v1316_v12, %s1998_s3 }
0x23f6   :  { %v1319_v38 = vpop.permute.xlu0 %1318 }
0x23f7   :  { %1782 = vmatmul.mubr.msk.bf16.vlgmr.msra.gmra.mrb[36].mxu0 %vm194_vm4, %v1319_v38 }
0x23f8   :  { %1797 = vmatprep.mubr.msk.bf16.mxu0 %vm1996_vm0, %v1995_v0  ;;  %1794 = vmatpush3.bf16.msra.mxu0 %v1821_v19 }
0x23f9   :  { %1795 = vmatprep.subr.bf16.mxu0 %v1995_v0 }
0x23fc   :  { %1796 = vmatpush3.bf16.msra.mxu0 %v1822_v20 }
0x24ca   :  { %v1357_v40 = vpop.f32.mrb[36].mxu0 }
0x24cb   :  { %v1363_v56 = vadd.f32 %v1357_v40, %v885_v39  ;;  %v1783_v41 = vpop.f32.mrb[37].mxu0 }
0x24cc   :  { %v1360_v43 = vpop.f32.mrb[38].mxu0 }
0x24cd   :  { %1907 = vtanh.f32 %v1363_v56  ;;  %v1784_v44 = vpop.f32.mrb[39].mxu0  ;;  %v1364_v46 = vmul.f32 0.5, %v1363_v56 }
0x24cf   :  { %1909 = vtanh.f32 %v1364_v46 }
0x24d7   :  { %v1908_v45 = vpop.eup %1907 }
0x24d8   :  { %1371 = vrot.lane.b32.xlu1 %v1908_v45, %s1993_s1 }
0x24d9   :  { %v1910_v55 = vpop.eup %1909 }
0x24da   :  { %v1366_v47 = vmul.f32 0.5, %v1910_v55 }
0x24dc   :  { %v1367_v48 = vadd.f32 0.5, %v1366_v47 }
0x24de   :  { %v1369_v27 = vmul.f32 %v1367_v48, %v1309_v34 }
0x254a   :  { %v1372_v63 = vpop.permute.xlu1 %1371 }
0x254b   :  { %v1374_v49 = vmul.f32 %v1372_v63, %v1367_v48 }
0x254d   :  { %1376 = vrot.lane.b32.xlu0 %v1374_v49, %s1998_s3 }
0x25bf   :  { %v1377_v9 = vpop.permute.xlu0 %1376 }
0x25c0   :  { %v1379_v50 = vadd.f32 %v1377_v9, %v1369_v27 }
0x25c2   :  { %1911 = vtanh.f32 %v1379_v50 }
0x25cc   :  { %v1912_v51 = vpop.eup %1911 }
0x25cd   :  { %1382 = vrot.lane.b32.xlu1 %v1912_v51, %s1993_s1 }
0x263f   :  { %v1383_v52 = vpop.permute.xlu1 %1382 }
0x2640   :  { %v1385_v53 = vmul.f32 %v1383_v52, %v1367_v48 }
0x2642   :  { %v1386_v54 = vpack.c.bf16 %v1385_v53, %v1385_v53 }
0x2644   :  { %1388 = vrot.lane.b32.xlu0 %v1386_v54, %s1998_s3 }
0x26b6   :  { %v1389_v61 = vpop.permute.xlu0 %1388 }
0x26b7   :  { %1790 = vmatmul.mubr.msk.bf16.vlgmr.msra.gmra.mrb[36].mxu1 %vm194_vm4, %v1389_v61 }
0x278a   :  { %v1427_v1 = vpop.f32.mrb[36].mxu1 }
0x278b   :  { %v1433_v7 = vadd.f32 %v1427_v1, %v888_v57  ;;  %v1791_v2 = vpop.f32.mrb[37].mxu1 }
0x278c   :  { %v1430_v4 = vpop.f32.mrb[38].mxu1 }
0x278d   :  { %1913 = vtanh.f32 %v1433_v7  ;;  %v1792_v5 = vpop.f32.mrb[39].mxu1  ;;  %v1434_v11 = vmul.f32 0.5, %v1433_v7 }
0x278f   :  { %1915 = vtanh.f32 %v1434_v11 }
0x2797   :  { %v1914_v10 = vpop.eup %1913 }
0x2798   :  { %1441 = vrot.lane.b32.xlu1 %v1914_v10, %s1993_s1 }
0x2799   :  { %v1916_v14 = vpop.eup %1915 }
0x279a   :  { %v1436_v15 = vmul.f32 0.5, %v1916_v14 }
0x279c   :  { %v1437_v16 = vadd.f32 0.5, %v1436_v15 }
0x279e   :  { %v1439_v58 = vmul.f32 %v1437_v16, %v1379_v50 }
0x280a   :  { %v1442_v17 = vpop.permute.xlu1 %1441 }
0x280b   :  { %v1444_v3 = vmul.f32 %v1442_v17, %v1437_v16 }
0x280d   :  { %1446 = vrot.lane.b32.xlu0 %v1444_v3, %s1998_s3 }
0x287f   :  { %v1447_v13 = vpop.permute.xlu0 %1446 }
0x2880   :  { %v1449_v18 = vadd.f32 %v1447_v13, %v1439_v58 }
0x2882   :  { %1917 = vtanh.f32 %v1449_v18 }
0x288c   :  { %v1918_v6 = vpop.eup %1917 }
0x288d   :  { %1452 = vrot.lane.b32.xlu1 %v1918_v6, %s1993_s1  ;;  %s1963_s1 = scalar_lea.vmem %s1534_s14, 128 }
0x288e   :  { %p1964_p2 = scmp.ne.s32.totalorder %s1534_s14, %s1963_s1  ;;  %p1969_p4 = scmp.lt.s32.totalorder %s1963_s1, %s1963_s1 }
0x2890   :  { %p1970_p5 = por %p1969_p4, %p1968_p3 }
0x2892   :  { %p1971_p6 = pnand %p1970_p5, %p1964_p2 }
0x28ff   :  { %v1453_v21 = vpop.permute.xlu1 %1452 }
0x2900   :  { %v1455_v22 = vmul.f32 %v1453_v21, %v1437_v16 }
0x2902   :  { %v1456_v59 = vpack.c.bf16 %v1455_v22, %v1455_v22 }
0x2904   :  { %1469 = vrot.lane.b32.xlu0 %v1456_v59, %s1998_s3 }
0x2976   :  { %v1470_v23 = vpop.permute.xlu0 %1469 }
0x2977   :  { %1798 = vmatmul.mubr.msk.bf16.vlgmr.msra.gmra.mrb[40].mxu0 %vm194_vm4, %v1470_v23 }
0x2a4a   :  { %v1520_v25 = vpop.f32.mrb[40].mxu0 }
0x2a4b   :  { %v1521_v0 = vadd.f32 %v1577_v24, %v1520_v25  ;;  %v1799_v26 = vpop.f32.mrb[41].mxu0 }
0x2a4c   :  { %v1523_v28 = vpop.f32.mrb[42].mxu0 }
0x2a4d   :  { %1526 = vst [vmem:[#allocation8] sm:$0xff] %v1521_v0  ;;  %v1800_v29 = vpop.f32.mrb[43].mxu0 }
0x2a4e   :  { %1974 = shalt.err (!%p1971_p6)
}
0x2a4f   :  { %s1975_s8 = scalar_lea.hbm %s2426_s9, 128 }
0x2a50   :  { %p1976_p7 = scmp.ne.s32.totalorder %s2426_s9, %s1975_s8  ;;  %p1979_p8 = scmp.lt.u32.totalorder %s1975_s8, %s2426_s9 }
0x2a52   :  { %p1981_p9 = pnand %p1979_p8, %p1976_p7 }
0x2a54   :  { %1984 = shalt.err (!%p1981_p9)
}
0x2a55   :  { %1536 = dma.vmem_to_hbm [thread:$0]  %s1534_s14, 128, %s2426_s9, [#allocation5]  }
0x2a56   :  { %1989 = dma.done.wait [#allocation5], 128  }
0x2a57   :  { %1990 = vsyncadd [#allocation5], 4294967168 }
0x2a58   :  { %1540 = vsyncpa [#allocation4], 1 }
0x2a59   :  { %1541 = vsyncpa [#allocation7], 1 }
0x2a5a   :  { %1542 = vsyncpa [#allocation5], 1 }

</bundles_post_ra>
